<compile_context>
chip_gen: v7x
topology: tpu7x:2x2x1
jax: 0.10.0
libtpu: 0.0.40
codegen_flags: <defaults>
</compile_context>

<pallas_src>
import math

import jax
import jax.numpy as jnp
from jax import lax
from jax.experimental import pallas as pl
from jax.experimental.pallas import tpu as pltpu

RF = 4      # receptive-field halo per side: conv1(k5,p2)=2 + conv2a(k3,p1)=1 + conv2b(k3,p1)=1
STRIP = 8   # halo strip rows per side actually DMA'd (>= RF, 8-aligned so the in-register
            # window concatenate is pure vreg stacking, no sublane shifts / masked stores)


def _pick_tile_t(T, ks, cin):
    """Largest time tile that divides T, keeps blocks 8/16-aligned, f32 slabs ~<= 1 MiB."""
    target = max(8 * ks, min(1024, (1 << 20) // max(4 * cin, 1)))
    if T <= target:
        return T
    step = math.lcm(8 * ks, 16)
    best = 0
    d = step
    while d <= target:
        if T % d == 0:
            best = d
        d += step
    # TODO(synk): masked remainder tile instead of whole-sequence fallback for awkward T.
    return best if best else T


def _make_kernel(T, tile_t, cin, ks):
    t_out = tile_t // ks
    l1 = tile_t + 4   # rows after conv1 (k=5, valid conv on the halo'd window)
    l2 = tile_t + 2   # rows after conv2a (k=3, valid conv)

    def prelu(v, a):
        return jnp.where(v > 0, v, a * v)

    def conv_valid(act, w_ref, b_ref, lout, start=0):
        # act: (L, cin) f32; w_ref: (K, cin, cout) bf16; b_ref: (1, cout) f32.
        actb = act.astype(jnp.bfloat16)          # cast once, slice bf16 taps below
        k_taps = w_ref.shape[0]
        cout = w_ref.shape[2]
        acc = jnp.zeros((lout, cout), jnp.float32)
        for k in range(k_taps):                  # static unroll; one bf16 MXU matmul per tap
            acc = acc + jnp.dot(actb[start + k:start + k + lout, :], w_ref[k],
                                preferred_element_type=jnp.float32)
        return acc + b_ref[...]

    def kernel(x_ref, halo_ref, gamma_ref, beta_ref,
               w1_ref, b1_ref, w2a_ref, b2a_ref, w2b_ref, b2b_ref,
               ws_ref, bs_ref, alphas_ref,
               out_ref, skip_ref, hp_ref):
        t0 = pl.program_id(1) * tile_t
        a1 = alphas_ref[0]
        a2 = alphas_ref[1]
        a3 = alphas_ref[2]
        a4 = alphas_ref[3]

        xf = x_ref[...].astype(jnp.float32)          # (tile_t, cin)
        halo = halo_ref[...].astype(jnp.float32)     # (2*STRIP, cin)

        # Halo'd window assembled in registers (aligned 8-row pieces -> pure vreg concat).
        # window row r <-> global time coord t0 - STRIP + r
        win = jnp.concatenate([halo[:STRIP, :], xf, halo[STRIP:, :]], axis=0)

        # conv1 = PReLU -> Conv1d(c_in, c_in, k=5, padding=2); rows [t0-2, t0+tile_t+2)
        h = conv_valid(prelu(win, a1), w1_ref, b1_ref, l1, start=STRIP - 4)

        # FiLM: per-channel affine (gamma/beta precomputed in the wrapper)
        h = gamma_ref[...] * h + beta_ref[...]

        # Rows outside the global sequence act as the next conv's zero padding.
        g1 = t0 - 2 + lax.broadcasted_iota(jnp.int32, (l1, 1), 0)
        h = jnp.where((g1 >= 0) & (g1 < T), h, 0.0)

        # conv2 = PReLU -> Conv1d(k=3,p=1) -> PReLU -> Conv1d(k=3,p=1)
        h = conv_valid(prelu(h, a2), w2a_ref, b2a_ref, l2)       # rows [t0-1, t0+tile_t+1)
        g2 = t0 - 1 + lax.broadcasted_iota(jnp.int32, (l2, 1), 0)
        h = jnp.where((g2 >= 0) & (g2 < T), h, 0.0)
        h = conv_valid(prelu(h, a3), w2b_ref, b2b_ref, tile_t)   # rows [t0, t0+tile_t)

        # residual + U-Net skip (bf16 write-back halves the dominant HBM traffic term)
        h = h + xf
        skip_ref[...] = h.astype(skip_ref.dtype)

        # stconv = PReLU -> Conv1d(c_in, c_out, k=ks, stride=ks).
        # PReLU once on the in-register value, stash to scratch, then each stride phase
        # is a strided VMEM read + one MXU matmul (skip write-back DMA is untouched).
        hp_ref[...] = prelu(h, a4)
        cout = ws_ref.shape[2]
        acc = jnp.zeros((t_out, cout), jnp.float32)
        for k in range(ks):                          # static unroll over stride phases
            rows = hp_ref[pl.ds(k, t_out, stride=ks), :]         # (t_out, cin) f32
            acc = acc + jnp.dot(rows.astype(jnp.bfloat16), ws_ref[k],
                                preferred_element_type=jnp.float32)
        out_ref[...] = (acc + bs_ref[...]).astype(out_ref.dtype)

    return kernel


def generator_down_pallas_tc(x_tc, sigma_emb, params, kernel_size, tile_t=None):
    """Channel-last core: x_tc (B, T, c_in) -> (h_out (B, T//ks, c_out) f32, skip (B, T, c_in) bf16).

    Use this entry point to chain UNIVERSE blocks without NCT<->NTC boundary transposes.
    """
    B, T, Cin = x_tc.shape
    Cout = params["ws"].shape[0]
    ks = kernel_size
    if T % ks != 0:
        raise ValueError("T must be a multiple of kernel_size (strided conv drops samples)")

    if tile_t is None:
        tile_t = _pick_tile_t(T, ks, Cin)
    if T % tile_t != 0 or tile_t % ks != 0:
        raise ValueError("tile_t must divide T and be a multiple of kernel_size")
    if tile_t != T and (tile_t % 16 != 0 or (tile_t // ks) % 8 != 0):
        raise ValueError("tile_t must be a multiple of 16 and tile_t//kernel_size a multiple "
                         "of 8 when tiling")
    n_t = T // tile_t
    t_out_tile = tile_t // ks

    x_tc = x_tc.astype(jnp.bfloat16)

    # Per-tile halo strips (STRIP rows each side; zeros beyond the sequence ends).
    xp = jnp.pad(x_tc, ((0, 0), (STRIP, STRIP), (0, 0)))
    strips = []
    for t in range(n_t):
        left = xp[:, t * tile_t: t * tile_t + STRIP, :]                       # coords [t0-8, t0)
        right = xp[:, (t + 1) * tile_t + STRIP: (t + 1) * tile_t + 2 * STRIP, :]  # [t0+tile, t0+tile+8)
        strips.append(jnp.concatenate([left, right], axis=1))                 # (B, 2*STRIP, Cin)
    halos = jnp.stack(strips, axis=1)                                         # (B, n_t, 2*STRIP, Cin)

    def wt(w):  # PyTorch Conv1d weight (Cout, Cin, K) -> (K, Cin, Cout), bf16
        return jnp.transpose(w, (2, 1, 0)).astype(jnp.bfloat16)

    w1, b1 = wt(params["w1"]), params["b1"].reshape(1, -1).astype(jnp.float32)
    w2a, b2a = wt(params["w2a"]), params["b2a"].reshape(1, -1).astype(jnp.float32)
    w2b, b2b = wt(params["w2b"]), params["b2b"].reshape(1, -1).astype(jnp.float32)
    ws, bs = wt(params["ws"]), params["bs"].reshape(1, -1).astype(jnp.float32)
    alphas = params["alphas"].astype(jnp.float32)                   # (4,) PReLU slopes

    # FiLM linear hoisted out of the kernel: gamma/beta per batch, per channel.
    gb = (sigma_emb.astype(jnp.float32) @ params["wf"].astype(jnp.float32).T
          + params["bf"].astype(jnp.float32))                       # (B, 2*Cin)
    gamma = gb[:, :Cin].reshape(B, 1, Cin)
    beta = gb[:, Cin:].reshape(B, 1, Cin)

    def const_spec(arr):
        return pl.BlockSpec(arr.shape, lambda b, t, _n=arr.ndim: (0,) * _n)

    kernel = _make_kernel(T, tile_t, Cin, ks)

    # VMEM budget: double-buffered tiles + weights + scratch + live-activation slack.
    tile_in = (tile_t * Cin + 2 * STRIP * Cin) * 2 + 2 * Cin * 4
    tile_out = tile_t * Cin * 2 + t_out_tile * Cout * 4
    wt_bytes = 2 * (w1.size + w2a.size + w2b.size + ws.size) + \
               4 * (b1.size + b2a.size + b2b.size + bs.size + 2 * Cin)
    scratch_bytes = tile_t * Cin * 4
    live_f32 = 8 * (tile_t + 2 * STRIP) * Cin * 4
    est = 2 * (tile_in + tile_out) + wt_bytes + scratch_bytes + live_f32 + (8 << 20)
    vmem_limit = int(min(max(est, 24 << 20), 48 << 20))   # <= 48 MiB: headroom on v7x (64 MiB/TC)

    out_tc, skip_tc = pl.pallas_call(
        kernel,
        out_shape=(
            jax.ShapeDtypeStruct((B, T // ks, Cout), jnp.float32),
            jax.ShapeDtypeStruct((B, T, Cin), jnp.bfloat16),
        ),
        grid=(B, n_t),
        in_specs=[
            pl.BlockSpec((None, tile_t, Cin), lambda b, t: (b, t, 0)),            # x tile
            pl.BlockSpec((None, None, 2 * STRIP, Cin), lambda b, t: (b, t, 0, 0)),  # halo strips
            pl.BlockSpec((None, 1, Cin), lambda b, t: (b, 0, 0)),                 # FiLM gamma
            pl.BlockSpec((None, 1, Cin), lambda b, t: (b, 0, 0)),                 # FiLM beta
            const_spec(w1), const_spec(b1),
            const_spec(w2a), const_spec(b2a),
            const_spec(w2b), const_spec(b2b),
            const_spec(ws), const_spec(bs),
            pl.BlockSpec(memory_space=pltpu.MemorySpace.SMEM),                    # PReLU alphas
        ],
        out_specs=(
            pl.BlockSpec((None, t_out_tile, Cout), lambda b, t: (b, t, 0)),
            pl.BlockSpec((None, tile_t, Cin), lambda b, t: (b, t, 0)),
        ),
        scratch_shapes=[pltpu.VMEM((tile_t, Cin), jnp.float32)],   # PReLU'd residual for stconv
        compiler_params=pltpu.CompilerParams(
            dimension_semantics=("parallel", "parallel"),
            vmem_limit_bytes=vmem_limit),
    )(x_tc, halos, gamma, beta,
      w1, b1, w2a, b2a, w2b, b2b, ws, bs, alphas)

    return out_tc, skip_tc


def generator_down_pallas(x, sigma_emb, params, kernel_size, tile_t=None):
    """PyTorch-layout wrapper: x (B, c_in, T) NCT -> (h_out (B, c_out, T//ks), skip (B, c_in, T)).

    skip is returned in bf16 (downstream UNIVERSE blocks consume bf16 anyway); use
    generator_down_pallas_tc directly to avoid the boundary transposes when chaining.
    """
    x_tc = jnp.transpose(x, (0, 2, 1))
    out_tc, skip_tc = generator_down_pallas_tc(x_tc, sigma_emb, params, kernel_size, tile_t)
    return jnp.transpose(out_tc, (0, 2, 1)), jnp.transpose(skip_tc, (0, 2, 1))


# ----------------------- pure-JAX reference (for validation) -----------------------
def _prelu_ref(x, a):
    return jnp.where(x > 0, x, a * x)


def _conv1d_ref(x, w, b, stride=1, padding=0):
    y = lax.conv_general_dilated(
        x, w, window_strides=(stride,), padding=[(padding, padding)],
        dimension_numbers=("NCH", "OIH", "NCH"))
    return y + b[None, :, None]


def generator_down_ref(x, sigma_emb, params, kernel_size):
    a = params["alphas"]
    C = x.shape[1]
    h = _conv1d_ref(_prelu_ref(x, a[0]), params["w1"], params["b1"], padding=2)
    gb = sigma_emb @ params["wf"].T + params["bf"]
    gamma, beta = gb[:, :C][:, :, None], gb[:, C:][:, :, None]
    h = gamma * h + beta
    h = _conv1d_ref(_prelu_ref(h, a[1]), params["w2a"], params["b2a"], padding=1)
    h = _conv1d_ref(_prelu_ref(h, a[2]), params["w2b"], params["b2b"], padding=1)
    h = h + x
    skip = h
    h_out = _conv1d_ref(_prelu_ref(h, a[3]), params["ws"], params["bs"],
                        stride=kernel_size, padding=0)
    return h_out, skip


if __name__ == "__main__":
    B, Cin, Cout, T, ks, E = 2, 8, 16, 64, 2, 32

    key = jax.random.PRNGKey(0)
    keys = jax.random.split(key, 12)
    s = 0.1
    params = {
        "w1": s * jax.random.normal(keys[0], (Cin, Cin, 5), jnp.float32),
        "b1": s * jax.random.normal(keys[1], (Cin,), jnp.float32),
        "wf": s * jax.random.normal(keys[2], (2 * Cin, E), jnp.float32),
        "bf": s * jax.random.normal(keys[3], (2 * Cin,), jnp.float32),
        "w2a": s * jax.random.normal(keys[4], (Cin, Cin, 3), jnp.float32),
        "b2a": s * jax.random.normal(keys[5], (Cin,), jnp.float32),
        "w2b": s * jax.random.normal(keys[6], (Cin, Cin, 3), jnp.float32),
        "b2b": s * jax.random.normal(keys[7], (Cin,), jnp.float32),
        "ws": s * jax.random.normal(keys[8], (Cout, Cin, ks), jnp.float32),
        "bs": s * jax.random.normal(keys[9], (Cout,), jnp.float32),
        "alphas": jnp.full((4,), 0.25, jnp.float32),   # nn.PReLU() default init
    }
    x = jax.random.normal(keys[10], (B, Cin, T), jnp.float32)
    sigma_emb = jax.random.normal(keys[11], (B, E), jnp.float32)

    h_want, skip_want = generator_down_ref(x, sigma_emb, params, ks)

    # single-tile path (tile_t == T)
    h1, sk1 = generator_down_pallas(x, sigma_emb, params, ks)
    # multi-tile halo path (4 time tiles)
    h2, sk2 = generator_down_pallas(x, sigma_emb, params, ks, tile_t=16)
    jax.block_until_ready((h1, sk1, h2, sk2))

    assert h1.shape == (B, Cout, T // ks) and sk1.shape == (B, Cin, T)
    assert h2.shape == (B, Cout, T // ks) and sk2.shape == (B, Cin, T)
    for got, want in ((h1, h_want), (sk1, skip_want), (h2, h_want), (sk2, skip_want)):
        got32 = got.astype(jnp.float32)
        err = float(jnp.max(jnp.abs(got32 - want)))
        assert jnp.allclose(got32, want, atol=5e-2, rtol=5e-2), f"max abs err {err}"
    print("KERNEL_OK")
</pallas_src>

<mosaic_0001>
module attributes {stable_mosaic.version = 11 : i64} {
  func.func @kernel(%arg0: i32, %arg1: i32, %arg2: memref<1x64x8xbf16, #tpu.memory_space<vmem>>, %arg3: memref<1x1x16x8xbf16, #tpu.memory_space<vmem>>, %arg4: memref<1x1x8xf32, #tpu.memory_space<vmem>>, %arg5: memref<1x1x8xf32, #tpu.memory_space<vmem>>, %arg6: memref<5x8x8xbf16, #tpu.memory_space<vmem>>, %arg7: memref<1x8xf32, #tpu.memory_space<vmem>>, %arg8: memref<3x8x8xbf16, #tpu.memory_space<vmem>>, %arg9: memref<1x8xf32, #tpu.memory_space<vmem>>, %arg10: memref<3x8x8xbf16, #tpu.memory_space<vmem>>, %arg11: memref<1x8xf32, #tpu.memory_space<vmem>>, %arg12: memref<2x8x16xbf16, #tpu.memory_space<vmem>>, %arg13: memref<1x16xf32, #tpu.memory_space<vmem>>, %arg14: memref<4xf32, #tpu.memory_space<smem>>, %arg15: memref<1x32x16xf32, #tpu.memory_space<vmem>>, %arg16: memref<1x64x8xbf16, #tpu.memory_space<vmem>>, %arg17: memref<64x8xf32, #tpu.memory_space<vmem>>) attributes {dimension_semantics = [#tpu.dimension_semantics<parallel>, #tpu.dimension_semantics<parallel>], iteration_bounds = array<i64: 2, 1>, scalar_prefetch = 0 : i64, scratch_operands = 1 : i64, tpu.core_type = #tpu.core_type<tc>, window_params = [{transform_indices = @transform_0, window_bounds = array<i64: 1, 64, 8>}, {transform_indices = @transform_1, window_bounds = array<i64: 1, 1, 16, 8>}, {transform_indices = @transform_2, window_bounds = array<i64: 1, 1, 8>}, {transform_indices = @transform_3, window_bounds = array<i64: 1, 1, 8>}, {pipeline_mode = #tpu.pipeline_mode<synchronous>, transform_indices = @transform_4, window_bounds = array<i64: 5, 8, 8>}, {pipeline_mode = #tpu.pipeline_mode<synchronous>, transform_indices = @transform_5, window_bounds = array<i64: 1, 8>}, {pipeline_mode = #tpu.pipeline_mode<synchronous>, transform_indices = @transform_6, window_bounds = array<i64: 3, 8, 8>}, {pipeline_mode = #tpu.pipeline_mode<synchronous>, transform_indices = @transform_7, window_bounds = array<i64: 1, 8>}, {pipeline_mode = #tpu.pipeline_mode<synchronous>, transform_indices = @transform_8, window_bounds = array<i64: 3, 8, 8>}, {pipeline_mode = #tpu.pipeline_mode<synchronous>, transform_indices = @transform_9, window_bounds = array<i64: 1, 8>}, {pipeline_mode = #tpu.pipeline_mode<synchronous>, transform_indices = @transform_10, window_bounds = array<i64: 2, 8, 16>}, {pipeline_mode = #tpu.pipeline_mode<synchronous>, transform_indices = @transform_11, window_bounds = array<i64: 1, 16>}, {transform_indices = @transform_12, window_bounds = array<i64: 4>}, {transform_indices = @transform_13, window_bounds = array<i64: 1, 32, 16>}, {transform_indices = @transform_14, window_bounds = array<i64: 1, 64, 8>}]} {
    %c64_i32 = arith.constant 64 : i32
    %0 = arith.muli %arg1, %c64_i32 : i32
    %c0 = arith.constant 0 : index
    %1 = memref.load %arg14[%c0] : memref<4xf32, #tpu.memory_space<smem>>
    %c1 = arith.constant 1 : index
    %2 = memref.load %arg14[%c1] : memref<4xf32, #tpu.memory_space<smem>>
    %c2 = arith.constant 2 : index
    %3 = memref.load %arg14[%c2] : memref<4xf32, #tpu.memory_space<smem>>
    %c3 = arith.constant 3 : index
    %4 = memref.load %arg14[%c3] : memref<4xf32, #tpu.memory_space<smem>>
    %c0_0 = arith.constant 0 : index
    %c0_1 = arith.constant 0 : index
    %c0_2 = arith.constant 0 : index
    %5 = vector.load %arg2[%c0_0, %c0_1, %c0_2] : memref<1x64x8xbf16, #tpu.memory_space<vmem>>, vector<1x64x8xbf16>
    %6 = vector.shape_cast %5 : vector<1x64x8xbf16> to vector<64x8xbf16>
    %7 = arith.extf %6 : vector<64x8xbf16> to vector<64x8xf32>
    %c0_3 = arith.constant 0 : index
    %c0_4 = arith.constant 0 : index
    %c0_5 = arith.constant 0 : index
    %c0_6 = arith.constant 0 : index
    %8 = vector.load %arg3[%c0_3, %c0_4, %c0_5, %c0_6] : memref<1x1x16x8xbf16, #tpu.memory_space<vmem>>, vector<1x1x16x8xbf16>
    %9 = vector.shape_cast %8 : vector<1x1x16x8xbf16> to vector<16x8xbf16>
    %10 = arith.extf %9 : vector<16x8xbf16> to vector<16x8xf32>
    %11 = vector.extract_strided_slice %10 {offsets = [0, 0], sizes = [8, 8], strides = [1, 1]} : vector<16x8xf32> to vector<8x8xf32>
    %12 = vector.extract_strided_slice %10 {offsets = [8, 0], sizes = [8, 8], strides = [1, 1]} : vector<16x8xf32> to vector<8x8xf32>
    %13 = tpu.concatenate %11, %7, %12 in 0 : vector<8x8xf32>, vector<64x8xf32>, vector<8x8xf32> -> vector<80x8xf32>
    %cst = arith.constant 0.000000e+00 : f32
    %14 = vector.broadcast %cst : f32 to vector<80x8xf32>
    %15 = arith.cmpf ogt, %13, %14 : vector<80x8xf32>
    %16 = vector.broadcast %1 : f32 to vector<80x8xf32>
    %17 = arith.mulf %16, %13 : vector<80x8xf32>
    %18 = arith.select %15, %13, %17 : vector<80x8xi1>, vector<80x8xf32>
    %19 = arith.truncf %18 : vector<80x8xf32> to vector<80x8xbf16>
    %cst_7 = arith.constant 0.000000e+00 : f32
    %20 = vector.broadcast %cst_7 : f32 to vector<68x8xf32>
    %21 = vector.extract_strided_slice %19 {offsets = [4, 0], sizes = [68, 8], strides = [1, 1]} : vector<80x8xbf16> to vector<68x8xbf16>
    %c0_8 = arith.constant 0 : index
    %c0_9 = arith.constant 0 : index
    %c0_10 = arith.constant 0 : index
    %22 = vector.load %arg6[%c0_8, %c0_9, %c0_10] : memref<5x8x8xbf16, #tpu.memory_space<vmem>>, vector<1x8x8xbf16>
    %23 = vector.shape_cast %22 : vector<1x8x8xbf16> to vector<8x8xbf16>
    %cst_11 = arith.constant dense<0.000000e+00> : vector<68x8xf32>
    %24 = tpu.matmul %21, %23, %cst_11 {dimension_numbers = #tpu.dot_dimension_numbers<[1], [0], [0], [1], [0, 0, 1, 1], [], []>} : vector<68x8xbf16>, vector<8x8xbf16>, vector<68x8xf32> -> vector<68x8xf32>
    %25 = arith.addf %20, %24 : vector<68x8xf32>
    %26 = vector.extract_strided_slice %19 {offsets = [5, 0], sizes = [68, 8], strides = [1, 1]} : vector<80x8xbf16> to vector<68x8xbf16>
    %c1_12 = arith.constant 1 : index
    %c0_13 = arith.constant 0 : index
    %c0_14 = arith.constant 0 : index
    %27 = vector.load %arg6[%c1_12, %c0_13, %c0_14] : memref<5x8x8xbf16, #tpu.memory_space<vmem>>, vector<1x8x8xbf16>
    %28 = vector.shape_cast %27 : vector<1x8x8xbf16> to vector<8x8xbf16>
    %cst_15 = arith.constant dense<0.000000e+00> : vector<68x8xf32>
    %29 = tpu.matmul %26, %28, %cst_15 {dimension_numbers = #tpu.dot_dimension_numbers<[1], [0], [0], [1], [0, 0, 1, 1], [], []>} : vector<68x8xbf16>, vector<8x8xbf16>, vector<68x8xf32> -> vector<68x8xf32>
    %30 = arith.addf %25, %29 : vector<68x8xf32>
    %31 = vector.extract_strided_slice %19 {offsets = [6, 0], sizes = [68, 8], strides = [1, 1]} : vector<80x8xbf16> to vector<68x8xbf16>
    %c2_16 = arith.constant 2 : index
    %c0_17 = arith.constant 0 : index
    %c0_18 = arith.constant 0 : index
    %32 = vector.load %arg6[%c2_16, %c0_17, %c0_18] : memref<5x8x8xbf16, #tpu.memory_space<vmem>>, vector<1x8x8xbf16>
    %33 = vector.shape_cast %32 : vector<1x8x8xbf16> to vector<8x8xbf16>
    %cst_19 = arith.constant dense<0.000000e+00> : vector<68x8xf32>
    %34 = tpu.matmul %31, %33, %cst_19 {dimension_numbers = #tpu.dot_dimension_numbers<[1], [0], [0], [1], [0, 0, 1, 1], [], []>} : vector<68x8xbf16>, vector<8x8xbf16>, vector<68x8xf32> -> vector<68x8xf32>
    %35 = arith.addf %30, %34 : vector<68x8xf32>
    %36 = vector.extract_strided_slice %19 {offsets = [7, 0], sizes = [68, 8], strides = [1, 1]} : vector<80x8xbf16> to vector<68x8xbf16>
    %c3_20 = arith.constant 3 : index
    %c0_21 = arith.constant 0 : index
    %c0_22 = arith.constant 0 : index
    %37 = vector.load %arg6[%c3_20, %c0_21, %c0_22] : memref<5x8x8xbf16, #tpu.memory_space<vmem>>, vector<1x8x8xbf16>
    %38 = vector.shape_cast %37 : vector<1x8x8xbf16> to vector<8x8xbf16>
    %cst_23 = arith.constant dense<0.000000e+00> : vector<68x8xf32>
    %39 = tpu.matmul %36, %38, %cst_23 {dimension_numbers = #tpu.dot_dimension_numbers<[1], [0], [0], [1], [0, 0, 1, 1], [], []>} : vector<68x8xbf16>, vector<8x8xbf16>, vector<68x8xf32> -> vector<68x8xf32>
    %40 = arith.addf %35, %39 : vector<68x8xf32>
    %41 = vector.extract_strided_slice %19 {offsets = [8, 0], sizes = [68, 8], strides = [1, 1]} : vector<80x8xbf16> to vector<68x8xbf16>
    %c4 = arith.constant 4 : index
    %c0_24 = arith.constant 0 : index
    %c0_25 = arith.constant 0 : index
    %42 = vector.load %arg6[%c4, %c0_24, %c0_25] : memref<5x8x8xbf16, #tpu.memory_space<vmem>>, vector<1x8x8xbf16>
    %43 = vector.shape_cast %42 : vector<1x8x8xbf16> to vector<8x8xbf16>
    %cst_26 = arith.constant dense<0.000000e+00> : vector<68x8xf32>
    %44 = tpu.matmul %41, %43, %cst_26 {dimension_numbers = #tpu.dot_dimension_numbers<[1], [0], [0], [1], [0, 0, 1, 1], [], []>} : vector<68x8xbf16>, vector<8x8xbf16>, vector<68x8xf32> -> vector<68x8xf32>
    %45 = arith.addf %40, %44 : vector<68x8xf32>
    %c0_27 = arith.constant 0 : index
    %c0_28 = arith.constant 0 : index
    %46 = vector.load %arg7[%c0_27, %c0_28] : memref<1x8xf32, #tpu.memory_space<vmem>>, vector<1x8xf32>
    %47 = vector.broadcast %46 : vector<1x8xf32> to vector<68x8xf32>
    %48 = arith.addf %45, %47 : vector<68x8xf32>
    %c0_29 = arith.constant 0 : index
    %c0_30 = arith.constant 0 : index
    %c0_31 = arith.constant 0 : index
    %49 = vector.load %arg4[%c0_29, %c0_30, %c0_31] : memref<1x1x8xf32, #tpu.memory_space<vmem>>, vector<1x1x8xf32>
    %50 = vector.shape_cast %49 : vector<1x1x8xf32> to vector<1x8xf32>
    %51 = vector.broadcast %50 : vector<1x8xf32> to vector<68x8xf32>
    %52 = arith.mulf %51, %48 : vector<68x8xf32>
    %c0_32 = arith.constant 0 : index
    %c0_33 = arith.constant 0 : index
    %c0_34 = arith.constant 0 : index
    %53 = vector.load %arg5[%c0_32, %c0_33, %c0_34] : memref<1x1x8xf32, #tpu.memory_space<vmem>>, vector<1x1x8xf32>
    %54 = vector.shape_cast %53 : vector<1x1x8xf32> to vector<1x8xf32>
    %55 = vector.broadcast %54 : vector<1x8xf32> to vector<68x8xf32>
    %56 = arith.addf %52, %55 : vector<68x8xf32>
    %c2_i32 = arith.constant 2 : i32
    %57 = arith.subi %0, %c2_i32 : i32
    %58 = tpu.iota {dimensions = array<i32: 0>} : vector<68x1xi32>
    %59 = vector.broadcast %57 : i32 to vector<68x1xi32>
    %60 = arith.addi %59, %58 : vector<68x1xi32>
    %c0_i32 = arith.constant 0 : i32
    %61 = vector.broadcast %c0_i32 : i32 to vector<68x1xi32>
    %62 = arith.cmpi sge, %60, %61 : vector<68x1xi32>
    %c64_i32_35 = arith.constant 64 : i32
    %63 = vector.broadcast %c64_i32_35 : i32 to vector<68x1xi32>
    %64 = arith.cmpi slt, %60, %63 : vector<68x1xi32>
    %65 = arith.andi %62, %64 : vector<68x1xi1>
    %cst_36 = arith.constant 0.000000e+00 : f32
    %66 = vector.shape_cast %65 : vector<68x1xi1> to vector<68x1xi1>
    %67 = vector.broadcast %66 : vector<68x1xi1> to vector<68x8xi1>
    %68 = vector.broadcast %cst_36 : f32 to vector<68x8xf32>
    %69 = arith.select %67, %56, %68 : vector<68x8xi1>, vector<68x8xf32>
    %cst_37 = arith.constant 0.000000e+00 : f32
    %70 = vector.broadcast %cst_37 : f32 to vector<68x8xf32>
    %71 = arith.cmpf ogt, %69, %70 : vector<68x8xf32>
    %72 = vector.broadcast %2 : f32 to vector<68x8xf32>
    %73 = arith.mulf %72, %69 : vector<68x8xf32>
    %74 = arith.select %71, %69, %73 : vector<68x8xi1>, vector<68x8xf32>
    %75 = arith.truncf %74 : vector<68x8xf32> to vector<68x8xbf16>
    %cst_38 = arith.constant 0.000000e+00 : f32
    %76 = vector.broadcast %cst_38 : f32 to vector<66x8xf32>
    %77 = vector.extract_strided_slice %75 {offsets = [0, 0], sizes = [66, 8], strides = [1, 1]} : vector<68x8xbf16> to vector<66x8xbf16>
    %c0_39 = arith.constant 0 : index
    %c0_40 = arith.constant 0 : index
    %c0_41 = arith.constant 0 : index
    %78 = vector.load %arg8[%c0_39, %c0_40, %c0_41] : memref<3x8x8xbf16, #tpu.memory_space<vmem>>, vector<1x8x8xbf16>
    %79 = vector.shape_cast %78 : vector<1x8x8xbf16> to vector<8x8xbf16>
    %cst_42 = arith.constant dense<0.000000e+00> : vector<66x8xf32>
    %80 = tpu.matmul %77, %79, %cst_42 {dimension_numbers = #tpu.dot_dimension_numbers<[1], [0], [0], [1], [0, 0, 1, 1], [], []>} : vector<66x8xbf16>, vector<8x8xbf16>, vector<66x8xf32> -> vector<66x8xf32>
    %81 = arith.addf %76, %80 : vector<66x8xf32>
    %82 = vector.extract_strided_slice %75 {offsets = [1, 0], sizes = [66, 8], strides = [1, 1]} : vector<68x8xbf16> to vector<66x8xbf16>
    %c1_43 = arith.constant 1 : index
    %c0_44 = arith.constant 0 : index
    %c0_45 = arith.constant 0 : index
    %83 = vector.load %arg8[%c1_43, %c0_44, %c0_45] : memref<3x8x8xbf16, #tpu.memory_space<vmem>>, vector<1x8x8xbf16>
    %84 = vector.shape_cast %83 : vector<1x8x8xbf16> to vector<8x8xbf16>
    %cst_46 = arith.constant dense<0.000000e+00> : vector<66x8xf32>
    %85 = tpu.matmul %82, %84, %cst_46 {dimension_numbers = #tpu.dot_dimension_numbers<[1], [0], [0], [1], [0, 0, 1, 1], [], []>} : vector<66x8xbf16>, vector<8x8xbf16>, vector<66x8xf32> -> vector<66x8xf32>
    %86 = arith.addf %81, %85 : vector<66x8xf32>
    %87 = vector.extract_strided_slice %75 {offsets = [2, 0], sizes = [66, 8], strides = [1, 1]} : vector<68x8xbf16> to vector<66x8xbf16>
    %c2_47 = arith.constant 2 : index
    %c0_48 = arith.constant 0 : index
    %c0_49 = arith.constant 0 : index
    %88 = vector.load %arg8[%c2_47, %c0_48, %c0_49] : memref<3x8x8xbf16, #tpu.memory_space<vmem>>, vector<1x8x8xbf16>
    %89 = vector.shape_cast %88 : vector<1x8x8xbf16> to vector<8x8xbf16>
    %cst_50 = arith.constant dense<0.000000e+00> : vector<66x8xf32>
    %90 = tpu.matmul %87, %89, %cst_50 {dimension_numbers = #tpu.dot_dimension_numbers<[1], [0], [0], [1], [0, 0, 1, 1], [], []>} : vector<66x8xbf16>, vector<8x8xbf16>, vector<66x8xf32> -> vector<66x8xf32>
    %91 = arith.addf %86, %90 : vector<66x8xf32>
    %c0_51 = arith.constant 0 : index
    %c0_52 = arith.constant 0 : index
    %92 = vector.load %arg9[%c0_51, %c0_52] : memref<1x8xf32, #tpu.memory_space<vmem>>, vector<1x8xf32>
    %93 = vector.broadcast %92 : vector<1x8xf32> to vector<66x8xf32>
    %94 = arith.addf %91, %93 : vector<66x8xf32>
    %c1_i32 = arith.constant 1 : i32
    %95 = arith.subi %0, %c1_i32 : i32
    %96 = tpu.iota {dimensions = array<i32: 0>} : vector<66x1xi32>
    %97 = vector.broadcast %95 : i32 to vector<66x1xi32>
    %98 = arith.addi %97, %96 : vector<66x1xi32>
    %c0_i32_53 = arith.constant 0 : i32
    %99 = vector.broadcast %c0_i32_53 : i32 to vector<66x1xi32>
    %100 = arith.cmpi sge, %98, %99 : vector<66x1xi32>
    %c64_i32_54 = arith.constant 64 : i32
    %101 = vector.broadcast %c64_i32_54 : i32 to vector<66x1xi32>
    %102 = arith.cmpi slt, %98, %101 : vector<66x1xi32>
    %103 = arith.andi %100, %102 : vector<66x1xi1>
    %cst_55 = arith.constant 0.000000e+00 : f32
    %104 = vector.shape_cast %103 : vector<66x1xi1> to vector<66x1xi1>
    %105 = vector.broadcast %104 : vector<66x1xi1> to vector<66x8xi1>
    %106 = vector.broadcast %cst_55 : f32 to vector<66x8xf32>
    %107 = arith.select %105, %94, %106 : vector<66x8xi1>, vector<66x8xf32>
    %cst_56 = arith.constant 0.000000e+00 : f32
    %108 = vector.broadcast %cst_56 : f32 to vector<66x8xf32>
    %109 = arith.cmpf ogt, %107, %108 : vector<66x8xf32>
    %110 = vector.broadcast %3 : f32 to vector<66x8xf32>
    %111 = arith.mulf %110, %107 : vector<66x8xf32>
    %112 = arith.select %109, %107, %111 : vector<66x8xi1>, vector<66x8xf32>
    %113 = arith.truncf %112 : vector<66x8xf32> to vector<66x8xbf16>
    %cst_57 = arith.constant 0.000000e+00 : f32
    %114 = vector.broadcast %cst_57 : f32 to vector<64x8xf32>
    %115 = vector.extract_strided_slice %113 {offsets = [0, 0], sizes = [64, 8], strides = [1, 1]} : vector<66x8xbf16> to vector<64x8xbf16>
    %c0_58 = arith.constant 0 : index
    %c0_59 = arith.constant 0 : index
    %c0_60 = arith.constant 0 : index
    %116 = vector.load %arg10[%c0_58, %c0_59, %c0_60] : memref<3x8x8xbf16, #tpu.memory_space<vmem>>, vector<1x8x8xbf16>
    %117 = vector.shape_cast %116 : vector<1x8x8xbf16> to vector<8x8xbf16>
    %cst_61 = arith.constant dense<0.000000e+00> : vector<64x8xf32>
    %118 = tpu.matmul %115, %117, %cst_61 {dimension_numbers = #tpu.dot_dimension_numbers<[1], [0], [0], [1], [0, 0, 1, 1], [], []>} : vector<64x8xbf16>, vector<8x8xbf16>, vector<64x8xf32> -> vector<64x8xf32>
    %119 = arith.addf %114, %118 : vector<64x8xf32>
    %120 = vector.extract_strided_slice %113 {offsets = [1, 0], sizes = [64, 8], strides = [1, 1]} : vector<66x8xbf16> to vector<64x8xbf16>
    %c1_62 = arith.constant 1 : index
    %c0_63 = arith.constant 0 : index
    %c0_64 = arith.constant 0 : index
    %121 = vector.load %arg10[%c1_62, %c0_63, %c0_64] : memref<3x8x8xbf16, #tpu.memory_space<vmem>>, vector<1x8x8xbf16>
    %122 = vector.shape_cast %121 : vector<1x8x8xbf16> to vector<8x8xbf16>
    %cst_65 = arith.constant dense<0.000000e+00> : vector<64x8xf32>
    %123 = tpu.matmul %120, %122, %cst_65 {dimension_numbers = #tpu.dot_dimension_numbers<[1], [0], [0], [1], [0, 0, 1, 1], [], []>} : vector<64x8xbf16>, vector<8x8xbf16>, vector<64x8xf32> -> vector<64x8xf32>
    %124 = arith.addf %119, %123 : vector<64x8xf32>
    %125 = vector.extract_strided_slice %113 {offsets = [2, 0], sizes = [64, 8], strides = [1, 1]} : vector<66x8xbf16> to vector<64x8xbf16>
    %c2_66 = arith.constant 2 : index
    %c0_67 = arith.constant 0 : index
    %c0_68 = arith.constant 0 : index
    %126 = vector.load %arg10[%c2_66, %c0_67, %c0_68] : memref<3x8x8xbf16, #tpu.memory_space<vmem>>, vector<1x8x8xbf16>
    %127 = vector.shape_cast %126 : vector<1x8x8xbf16> to vector<8x8xbf16>
    %cst_69 = arith.constant dense<0.000000e+00> : vector<64x8xf32>
    %128 = tpu.matmul %125, %127, %cst_69 {dimension_numbers = #tpu.dot_dimension_numbers<[1], [0], [0], [1], [0, 0, 1, 1], [], []>} : vector<64x8xbf16>, vector<8x8xbf16>, vector<64x8xf32> -> vector<64x8xf32>
    %129 = arith.addf %124, %128 : vector<64x8xf32>
    %c0_70 = arith.constant 0 : index
    %c0_71 = arith.constant 0 : index
    %130 = vector.load %arg11[%c0_70, %c0_71] : memref<1x8xf32, #tpu.memory_space<vmem>>, vector<1x8xf32>
    %131 = vector.broadcast %130 : vector<1x8xf32> to vector<64x8xf32>
    %132 = arith.addf %129, %131 : vector<64x8xf32>
    %133 = arith.addf %132, %7 : vector<64x8xf32>
    %134 = arith.truncf %133 : vector<64x8xf32> to vector<64x8xbf16>
    %c0_72 = arith.constant 0 : index
    %c0_73 = arith.constant 0 : index
    %c0_74 = arith.constant 0 : index
    %135 = vector.load %arg16[%c0_72, %c0_73, %c0_74] : memref<1x64x8xbf16, #tpu.memory_space<vmem>>, vector<1x64x8xbf16>
    %136 = vector.shape_cast %135 : vector<1x64x8xbf16> to vector<64x8xbf16>
    %137 = vector.shape_cast %134 : vector<64x8xbf16> to vector<1x64x8xbf16>
    tpu.vector_store %arg16[%c0_72, %c0_73, %c0_74], %137 {strides = array<i32>} : memref<1x64x8xbf16, #tpu.memory_space<vmem>>, vector<1x64x8xbf16>,
    %cst_75 = arith.constant 0.000000e+00 : f32
    %138 = vector.broadcast %cst_75 : f32 to vector<64x8xf32>
    %139 = arith.cmpf ogt, %133, %138 : vector<64x8xf32>
    %140 = vector.broadcast %4 : f32 to vector<64x8xf32>
    %141 = arith.mulf %140, %133 : vector<64x8xf32>
    %142 = arith.select %139, %133, %141 : vector<64x8xi1>, vector<64x8xf32>
    %c0_76 = arith.constant 0 : index
    %c0_77 = arith.constant 0 : index
    %143 = vector.load %arg17[%c0_76, %c0_77] : memref<64x8xf32, #tpu.memory_space<vmem>>, vector<64x8xf32>
    tpu.vector_store %arg17[%c0_76, %c0_77], %142 {strides = array<i32>} : memref<64x8xf32, #tpu.memory_space<vmem>>, vector<64x8xf32>,
    %cst_78 = arith.constant 0.000000e+00 : f32
    %144 = vector.broadcast %cst_78 : f32 to vector<32x16xf32>
    %c0_79 = arith.constant 0 : index
    %c0_80 = arith.constant 0 : index
    %145 = tpu.strided_load %arg17[%c0_79, %c0_80] {strides = array<i32: 2, 1>} : memref<64x8xf32, #tpu.memory_space<vmem>>, vector<32x8xf32>
    %146 = arith.truncf %145 : vector<32x8xf32> to vector<32x8xbf16>
    %c0_81 = arith.constant 0 : index
    %c0_82 = arith.constant 0 : index
    %c0_83 = arith.constant 0 : index
    %147 = vector.load %arg12[%c0_81, %c0_82, %c0_83] : memref<2x8x16xbf16, #tpu.memory_space<vmem>>, vector<1x8x16xbf16>
    %148 = vector.shape_cast %147 : vector<1x8x16xbf16> to vector<8x16xbf16>
    %cst_84 = arith.constant dense<0.000000e+00> : vector<32x16xf32>
    %149 = tpu.matmul %146, %148, %cst_84 {dimension_numbers = #tpu.dot_dimension_numbers<[1], [0], [0], [1], [0, 0, 1, 1], [], []>} : vector<32x8xbf16>, vector<8x16xbf16>, vector<32x16xf32> -> vector<32x16xf32>
    %150 = arith.addf %144, %149 : vector<32x16xf32>
    %c1_85 = arith.constant 1 : index
    %c0_86 = arith.constant 0 : index
    %151 = tpu.strided_load %arg17[%c1_85, %c0_86] {strides = array<i32: 2, 1>} : memref<64x8xf32, #tpu.memory_space<vmem>>, vector<32x8xf32>
    %152 = arith.truncf %151 : vector<32x8xf32> to vector<32x8xbf16>
    %c1_87 = arith.constant 1 : index
    %c0_88 = arith.constant 0 : index
    %c0_89 = arith.constant 0 : index
    %153 = vector.load %arg12[%c1_87, %c0_88, %c0_89] : memref<2x8x16xbf16, #tpu.memory_space<vmem>>, vector<1x8x16xbf16>
    %154 = vector.shape_cast %153 : vector<1x8x16xbf16> to vector<8x16xbf16>
    %cst_90 = arith.constant dense<0.000000e+00> : vector<32x16xf32>
    %155 = tpu.matmul %152, %154, %cst_90 {dimension_numbers = #tpu.dot_dimension_numbers<[1], [0], [0], [1], [0, 0, 1, 1], [], []>} : vector<32x8xbf16>, vector<8x16xbf16>, vector<32x16xf32> -> vector<32x16xf32>
    %156 = arith.addf %150, %155 : vector<32x16xf32>
    %c0_91 = arith.constant 0 : index
    %c0_92 = arith.constant 0 : index
    %157 = vector.load %arg13[%c0_91, %c0_92] : memref<1x16xf32, #tpu.memory_space<vmem>>, vector<1x16xf32>
    %158 = vector.broadcast %157 : vector<1x16xf32> to vector<32x16xf32>
    %159 = arith.addf %156, %158 : vector<32x16xf32>
    %c0_93 = arith.constant 0 : index
    %c0_94 = arith.constant 0 : index
    %c0_95 = arith.constant 0 : index
    %160 = vector.load %arg15[%c0_93, %c0_94, %c0_95] : memref<1x32x16xf32, #tpu.memory_space<vmem>>, vector<1x32x16xf32>
    %161 = vector.shape_cast %160 : vector<1x32x16xf32> to vector<32x16xf32>
    %162 = vector.shape_cast %159 : vector<32x16xf32> to vector<1x32x16xf32>
    tpu.vector_store %arg15[%c0_93, %c0_94, %c0_95], %162 {strides = array<i32>} : memref<1x32x16xf32, #tpu.memory_space<vmem>>, vector<1x32x16xf32>,
    return
  }
  func.func @transform_0(%arg0: i32, %arg1: i32) -> (i32, i32, i32) {
    %c0_i32 = arith.constant 0 : i32
    %c0_i32_0 = arith.constant 0 : i32
    return %arg0, %arg1, %c0_i32 : i32, i32, i32
  }
  func.func @transform_1(%arg0: i32, %arg1: i32) -> (i32, i32, i32, i32) {
    %c0_i32 = arith.constant 0 : i32
    %c0_i32_0 = arith.constant 0 : i32
    %c0_i32_1 = arith.constant 0 : i32
    return %arg0, %arg1, %c0_i32, %c0_i32_0 : i32, i32, i32, i32
  }
  func.func @transform_2(%arg0: i32, %arg1: i32) -> (i32, i32, i32) {
    %c0_i32 = arith.constant 0 : i32
    %c0_i32_0 = arith.constant 0 : i32
    %c0_i32_1 = arith.constant 0 : i32
    return %arg0, %c0_i32, %c0_i32_0 : i32, i32, i32
  }
  func.func @transform_3(%arg0: i32, %arg1: i32) -> (i32, i32, i32) {
    %c0_i32 = arith.constant 0 : i32
    %c0_i32_0 = arith.constant 0 : i32
    %c0_i32_1 = arith.constant 0 : i32
    return %arg0, %c0_i32, %c0_i32_0 : i32, i32, i32
  }
  func.func @transform_4(%arg0: i32, %arg1: i32) -> (i32, i32, i32) {
    %c0_i32 = arith.constant 0 : i32
    %c0_i32_0 = arith.constant 0 : i32
    %c0_i32_1 = arith.constant 0 : i32
    %c0_i32_2 = arith.constant 0 : i32
    return %c0_i32, %c0_i32_0, %c0_i32_1 : i32, i32, i32
  }
  func.func @transform_5(%arg0: i32, %arg1: i32) -> (i32, i32) {
    %c0_i32 = arith.constant 0 : i32
    %c0_i32_0 = arith.constant 0 : i32
    %c0_i32_1 = arith.constant 0 : i32
    return %c0_i32, %c0_i32_0 : i32, i32
  }
  func.func @transform_6(%arg0: i32, %arg1: i32) -> (i32, i32, i32) {
    %c0_i32 = arith.constant 0 : i32
    %c0_i32_0 = arith.constant 0 : i32
    %c0_i32_1 = arith.constant 0 : i32
    %c0_i32_2 = arith.constant 0 : i32
    return %c0_i32, %c0_i32_0, %c0_i32_1 : i32, i32, i32
  }
  func.func @transform_7(%arg0: i32, %arg1: i32) -> (i32, i32) {
    %c0_i32 = arith.constant 0 : i32
    %c0_i32_0 = arith.constant 0 : i32
    %c0_i32_1 = arith.constant 0 : i32
    return %c0_i32, %c0_i32_0 : i32, i32
  }
  func.func @transform_8(%arg0: i32, %arg1: i32) -> (i32, i32, i32) {
    %c0_i32 = arith.constant 0 : i32
    %c0_i32_0 = arith.constant 0 : i32
    %c0_i32_1 = arith.constant 0 : i32
    %c0_i32_2 = arith.constant 0 : i32
    return %c0_i32, %c0_i32_0, %c0_i32_1 : i32, i32, i32
  }
  func.func @transform_9(%arg0: i32, %arg1: i32) -> (i32, i32) {
    %c0_i32 = arith.constant 0 : i32
    %c0_i32_0 = arith.constant 0 : i32
    %c0_i32_1 = arith.constant 0 : i32
    return %c0_i32, %c0_i32_0 : i32, i32
  }
  func.func @transform_10(%arg0: i32, %arg1: i32) -> (i32, i32, i32) {
    %c0_i32 = arith.constant 0 : i32
    %c0_i32_0 = arith.constant 0 : i32
    %c0_i32_1 = arith.constant 0 : i32
    %c0_i32_2 = arith.constant 0 : i32
    return %c0_i32, %c0_i32_0, %c0_i32_1 : i32, i32, i32
  }
  func.func @transform_11(%arg0: i32, %arg1: i32) -> (i32, i32) {
    %c0_i32 = arith.constant 0 : i32
    %c0_i32_0 = arith.constant 0 : i32
    %c0_i32_1 = arith.constant 0 : i32
    return %c0_i32, %c0_i32_0 : i32, i32
  }
  func.func @transform_12(%arg0: i32, %arg1: i32) -> i32 {
    %c0_i32 = arith.constant 0 : i32
    %c0_i32_0 = arith.constant 0 : i32
    return %c0_i32 : i32
  }
  func.func @transform_13(%arg0: i32, %arg1: i32) -> (i32, i32, i32) {
    %c0_i32 = arith.constant 0 : i32
    %c0_i32_0 = arith.constant 0 : i32
    return %arg0, %arg1, %c0_i32 : i32, i32, i32
  }
  func.func @transform_14(%arg0: i32, %arg1: i32) -> (i32, i32, i32) {
    %c0_i32 = arith.constant 0 : i32
    %c0_i32_0 = arith.constant 0 : i32
    return %arg0, %arg1, %c0_i32 : i32, i32, i32
  }
}

</mosaic_0001>

<bundles_post_ra>
// kernel: tpu_custom_call.1
= control target key start
LH: loop header
LB: loop body
LE: loop exit
PB: predicated region body
PF: predicated region fallthrough
CT: control target
= control target key end

     0   :  { %20 = vsyncpa [#allocation4], 0  ;;  %s3205_s29 = smov 0   ;;  %s3207_s30 = smov 0   ;;  %s3839_s0 = inlined_call_operand.vmem [shape: bf16[2,64,8], index: 0, kind: input, shape index: {}]   ;;  %s3840_s1 = inlined_call_operand.vmem [shape: bf16[2,1,16,8], index: 1, kind: input, shape index: {}]   ;;  %s3841_s2 = inlined_call_operand.vmem [shape: f32[2,1,8], index: 2, kind: input, shape index: {}]   ;;  %s3842_s3 = inlined_call_operand.vmem [shape: f32[2,1,8], index: 3, kind: input, shape index: {}]   ;;  %s3843_s4 = inlined_call_operand.vmem [shape: bf16[5,8,8], index: 4, kind: input, shape index: {}]   ;;  %s3844_s5 = inlined_call_operand.vmem [shape: f32[1,8], index: 5, kind: input, shape index: {}]   ;;  %s3845_s6 = inlined_call_operand.vmem [shape: bf16[3,8,8], index: 6, kind: input, shape index: {}]   ;;  %s3846_s7 = inlined_call_operand.vmem [shape: f32[1,8], index: 7, kind: input, shape index: {}]   ;;  %s3847_s8 = inlined_call_operand.vmem [shape: bf16[3,8,8], index: 8, kind: input, shape index: {}]   ;;  %s3848_s9 = inlined_call_operand.vmem [shape: f32[1,8], index: 9, kind: input, shape index: {}]   ;;  %s3849_s10 = inlined_call_operand.vmem [shape: bf16[2,8,16], index: 10, kind: input, shape index: {}]   ;;  %s3850_s11 = inlined_call_operand.vmem [shape: f32[1,16], index: 11, kind: input, shape index: {}]   ;;  %s3851_s12 = inlined_call_operand.vmem [shape: f32[4], index: 12, kind: input, shape index: {}]   ;;  %s3852_s13 = inlined_call_operand.vmem [shape: f32[2,32,16], index: 13, kind: output, shape index: {0}]   ;;  %s3853_s14 = inlined_call_operand.vmem [shape: bf16[2,64,8], index: 14, kind: output, shape index: {1}]  }
   0x1   :  { %s3209_s15 = smov 0  }
   0x2 LB: > { %s2599_s16 = sadd.s32 4294967295, %s3125_s15   ;;  %s38_s17 = sadd.s32 1, %s3121_s30  ;;  %s3125_s15 = sphi %s3209_s15, %s26_s15   ;;  %s3121_s30 = sphi %s3207_s30, %s3857_s30   ;;  %s3117_s29 = sphi %s3205_s29, %s3856_s29  }
   0x3   : > { %p40_p0 = scmp.ge.s32.totalorder %s38_s17, 2  ;;  %p2601_p1 = scmp.ge.s32.totalorder %s3125_s15, 1 }
   0x4   : > { %p396_p2 = scmp.lt.s32.totalorder %s3125_s15, 3  ;;  %p3230_p4 = scmp.eq.s32.totalorder %s2599_s16, 0 }
   0x5   : > { %s3859_s17 = smov (%p40_p0, %s38_s17), 0  ;;  %s433_s22 = sshll.u32 %s3851_s12, 4  ;;  %s434_s22 = int_to_ptr.vmem [resolvable:$true] %s433_s22 }
   0x6   : > { %p3226_p3 = pnand %p2601_p1, %p396_p2  ;;  %s3084_s23 = scalar_lea.vmem %s434_s22, 16 }
   0x7   : > { %p3085_p7 = scmp.ne.s32.totalorder %s434_s22, %s3084_s23  ;;  %p3092_p11 = scmp.lt.s32.totalorder %s434_s22, %s434_s22 }
   0x8   : > { %p3051_p5 = pneg %p3226_p3  ;;  %p3093_p12 = scmp.lt.s32.totalorder %s3084_s23, %s3084_s23 }
   0xa   : > { %p3052_p6 = pnand %p3230_p4, %p3051_p5  ;;  %p3094_p13 = por %p3093_p12, %p3092_p11 }
   0xc   : > { %p3086_p8 = pneg %p3052_p6 }
   0xe   : > { %p3087_p9 = pnand %p3086_p8, %p3085_p7 }
  0x10   : > { %p3088_p10 = pneg %p3087_p9 }
  0x12   : > { %p3095_p0 = pnand %p3094_p13, %p3088_p10 }
  0x14   : > { %3098 = shalt.err (!%p3095_p0)
}
  0x15   : > { %s3127_s24 = smov [#allocation3]   ;;  %483 = sbr.rel (%p3226_p3) target bundleno = 1153 (0x481), region = 72 }
  0x16   : > { %3054 = dma.vmem_to_smem (!%p3052_p6), %s434_s22, 16, %s3127_s24, [#allocation4]  }
  0x1c   : > { %3112 = dma.done.wait (%p3230_p4), [#allocation4], 16  }
  0x1d   : > { %3114 = vsyncadd (%p3230_p4), [#allocation4], 4294967280 }
  0x1e   : > { %489 = sfence }
  0x1f   : > { %v2617_v0 = vld [vmem:[%s3843_s4 + $0x4] sm:$0xf]  ;;  %vm733_vm0 = vcmask 1043456   ;;  %p563_p1 = scmp.lt.s32.totalorder %s3117_s29, 1  ;;  %v3128_v1 = vmov 0.0   ;;  %s609_s27 = sld [smem:[#allocation3]] }
  0x20   : > { %2802 = vmatprep.subr.bf16.mxu0 %v3128_v1  ;;  %3020 = vmatprep.subr.bf16.mxu1 %v3128_v1  ;;  %v735_v2 = vsel %vm733_vm0, %v2617_v0, 0  ;;  %vm3129_vm1 = vmmov 0   ;;  %v2628_v44 = vld [vmem:[%s3843_s4 + $0x8] sm:$0xf]  ;;  %vm672_vm10 = vsmask.f32 5376 }
  0x21   : > { %2803 = vmatpush3.bf16.msra.mxu0 %v735_v2  ;;  %3021 = vmatpush3.bf16.msra.mxu1 %v735_v2  ;;  %s3861_s29 = smov (!%p563_p1, %s3117_s29), 1  ;;  %vm717_vm11 = vcmask 64512   ;;  %v942_v49 = vsel %vm733_vm0, %v2628_v44, 0  ;;  %v669_v62 = vld [vmem:[%s3843_s4] sm:$0xf]  ;;  %vm814_vm15 = vcmask 1045504  }
  0x22   : > { %2804 = vmatprep.mubr.msk.bf16.mxu0 %vm3129_vm1, %v3128_v1  ;;  %2816 = vmatprep.mubr.msk.bf16.mxu1 %vm3129_vm1, %v3128_v1  ;;  %s3263_s28 = sshll.u32 %s3861_s29, 5  ;;  %s2699_s16 = sshll.u32 %s3861_s29, 3  ;;  %vm1027_vm14 = vsmask.f32 4352 }
  0x23   : > { %2846 = vmatprep.subr.bf16.mxu0 %v3128_v1  ;;  %2824 = vmatprep.subr.bf16.mxu1 %v3128_v1  ;;  %s570_s20 = scalar_lea.vmem %s3839_s0, %s3263_s28  ;;  %s580_s23 = scalar_lea.vmem %s3840_s1, %s2699_s16 }
  0x24   : > { %v2711_v3 = vld [vmem:[%s570_s20] sm:$0xff]   ;;  %v2730_v4 = vld [vmem:[%s570_s20 + $0x8] sm:$0xff]   ;;  %v2731_v10 = vld [vmem:[%s570_s20 + $0x10] sm:$0xff]   ;;  %s2614_s16 = sld [smem:[#allocation3 + $0x1]]  ;;  %s586_s22 = scalar_lea.vmem %s3842_s3, %s3861_s29 }
  0x25   : > { %v2727_v5 = vld [vmem:[%s580_s23] sm:$0xff]   ;;  %v3274_v6 = vunpack.c.l.bf16 %v2711_v3  ;;  %v3276_v7 = vunpack.c.h.bf16 %v2711_v3  ;;  %v3278_v8 = vunpack.c.l.bf16 %v2730_v4  ;;  %v2732_v11 = vld [vmem:[%s570_s20 + $0x18] sm:$0xff]   ;;  %v643_v12 = vstv %s609_s27  ;;  %s583_s27 = scalar_lea.vmem %s3841_s2, %s3861_s29  ;;  %s2615_s19 = sld [smem:[#allocation3 + $0x2]] }
  0x26   : > { %v2728_v9 = vunpack.c.l.bf16 %v2727_v5  ;;  %v3280_v13 = vunpack.c.h.bf16 %v2731_v10  ;;  %v3282_v14 = vunpack.c.l.bf16 %v2732_v11  ;;  %v3284_v15 = vunpack.c.h.bf16 %v2732_v11  ;;  %s2616_s25 = sld [smem:[#allocation3 + $0x3]]  ;;  %s595_s23 = scalar_lea.vmem %s3852_s13, %s3263_s28 }
  0x27   : > { %vm634_vm3 = vcmp.gt.f32.partialorder %v3274_v6, 0.0  ;;  %vm635_vm4 = vcmp.gt.f32.partialorder %v3276_v7, 0.0  ;;  %vm636_vm5 = vcmp.gt.f32.partialorder %v3278_v8, 0.0  ;;  %v645_v17 = vmul.f32 %v3274_v6, %v643_v12 }
  0x28   : > { %vm633_vm2 = vcmp.gt.f32.partialorder %v2728_v9, 0.0  ;;  %v644_v16 = vmul.f32 %v2728_v9, %v643_v12  ;;  %v646_v18 = vmul.f32 %v3276_v7, %v643_v12  ;;  %v647_v19 = vmul.f32 %v3278_v8, %v643_v12 }
  0x29   : > { %v2729_v20 = vunpack.c.h.bf16 %v2727_v5  ;;  %vm639_vm6 = vcmp.gt.f32.partialorder %v3280_v13, 0.0  ;;  %vm640_vm7 = vcmp.gt.f32.partialorder %v3282_v14, 0.0  ;;  %vm641_vm8 = vcmp.gt.f32.partialorder %v3284_v15, 0.0 }
  0x2a   : > { %v654_v21 = vsel %vm633_vm2, %v2728_v9, %v644_v16  ;;  %v655_v22 = vsel %vm634_vm3, %v3274_v6, %v645_v17  ;;  %v656_v23 = vsel %vm635_vm4, %v3276_v7, %v646_v18  ;;  %v657_v24 = vsel %vm636_vm5, %v3278_v8, %v647_v19 }
  0x2b   : > { %v3298_v25 = vpack.c.bf16 %v655_v22, %v654_v21  ;;  %v3300_v26 = vpack.c.bf16 %v657_v24, %v656_v23  ;;  %vm642_vm9 = vcmp.gt.f32.partialorder %v2729_v20, 0.0  ;;  %v650_v27 = vmul.f32 %v3280_v13, %v643_v12 }
  0x2c   : > { %v651_v28 = vmul.f32 %v3282_v14, %v643_v12  ;;  %v652_v29 = vmul.f32 %v3284_v15, %v643_v12  ;;  %v653_v30 = vmul.f32 %v2729_v20, %v643_v12  ;;  %v3305_v31 = vunpack.c.h.bf16 %v2730_v4 }
  0x2d   : > { %v674_v32 = vshrl.u32 %v3298_v25, 16  ;;  %v677_v33 = vshll.u32 %v3298_v25, 16  ;;  %v682_v34 = vshrl.u32 %v3300_v26, 16  ;;  %v685_v35 = vshll.u32 %v3300_v26, 16 }
  0x2e   : > { %v660_v36 = vsel %vm639_vm6, %v3280_v13, %v650_v27  ;;  %v661_v37 = vsel %vm640_vm7, %v3282_v14, %v651_v28  ;;  %v662_v38 = vsel %vm641_vm8, %v3284_v15, %v652_v29  ;;  %v663_v39 = vsel %vm642_vm9, %v2729_v20, %v653_v30 }
  0x2f   : > { %v676_v40 = vrot.slane %v674_v32, 2  ;;  %v679_v41 = vrot.slane %v677_v33, 3  ;;  %v684_v42 = vrot.slane %v682_v34, 2  ;;  %v687_v43 = vrot.slane %v685_v35, 3 }
  0x30   : > { %v3323_v47 = vpack.c.bf16 %v661_v37, %v660_v36  ;;  %v3325_v48 = vpack.c.bf16 %v663_v39, %v662_v38  ;;  %v3328_v50 = vunpack.c.l.bf16 %v2731_v10  ;;  %vm637_vm12 = vcmp.gt.f32.partialorder %v3305_v31, 0.0 }
  0x31   : > { %v680_v45 = vor.u32 %v679_v41, %v676_v40  ;;  %v688_v46 = vor.u32 %v687_v43, %v684_v42  ;;  %v648_v51 = vmul.f32 %v3305_v31, %v643_v12  ;;  %v1028_v63 = vrot.slane %v674_v32, 3 }
  0x32   : > { %v700_v53 = vshrl.u32 %v3323_v47, 16  ;;  %v703_v54 = vshll.u32 %v3323_v47, 16  ;;  %v709_v55 = vshrl.u32 %v3325_v48, 16  ;;  %v712_v56 = vshll.u32 %v3325_v48, 16 }
  0x33   : > { %v689_v52 = vsel %vm672_vm10, %v680_v45, %v688_v46  ;;  %vm638_vm13 = vcmp.gt.f32.partialorder %v3328_v50, 0.0  ;;  %v649_v57 = vmul.f32 %v3328_v50, %v643_v12  ;;  %v658_v58 = vsel %vm637_vm12, %v3305_v31, %v648_v51  ;;  %v2634_v51 = vld [vmem:[%s3843_s4 + $0xc] sm:$0xf] }
  0x34   : > { %2805 = vmatmul.mubr.msk.bf16.vlgmr.msra.gmra.mrb[0].mxu0 %vm717_vm11, %v689_v52  ;;  %v702_v59 = vrot.slane %v700_v53, 2  ;;  %v705_v60 = vrot.slane %v703_v54, 3  ;;  %v711_v61 = vrot.slane %v709_v55, 2  ;;  %v1029_v0 = vrot.slane %v677_v33, 4 }
  0x35   : > { %2847 = vmatpush3.bf16.msra.mxu0 %v942_v49  ;;  %2808 = vmatprep.mubr.msk.bf16.mxu0 %vm3129_vm1, %v3128_v1  ;;  %v714_v2 = vrot.slane %v712_v56, 3  ;;  %v659_v3 = vsel %vm638_vm13, %v3328_v50, %v649_v57  ;;  %v840_v10 = vsel %vm733_vm0, %v669_v62, 0  ;;  %v1031_v11 = vrot.slane %v682_v34, 3 }
  0x36   : > { %2890 = vmatprep.subr.bf16.mxu0 %v3128_v1  ;;  %v706_v4 = vor.u32 %v705_v60, %v702_v59  ;;  %v3348_v5 = vpack.c.bf16 %v659_v3, %v658_v58  ;;  %v1032_v12 = vrot.slane %v685_v35, 4  ;;  %v1030_v19 = vor.u32 %v1029_v0, %v1028_v63 }
  0x37   : > { %v715_v9 = vor.u32 %v714_v2, %v711_v61  ;;  %v1149_v24 = vrot.slane %v3298_v25, 4  ;;  %v1150_v27 = vrot.slane %v3300_v26, 4  ;;  %v1039_v28 = vrot.slane %v700_v53, 3 }
  0x38   : > { %v691_v16 = vshrl.u32 %v3348_v5, 16  ;;  %v694_v17 = vshll.u32 %v3348_v5, 16  ;;  %v3362_v23 = vor.u32 %v1032_v12, %v1031_v11  ;;  %v1040_v29 = vrot.slane %v703_v54, 4 }
  0x39   : > { %v716_v18 = vsel %vm672_vm10, %v706_v4, %v715_v9  ;;  %v1152_v30 = vrot.slane %v3348_v5, 4  ;;  %v3374_v34 = vsel %vm733_vm0, %v1149_v24, %v1150_v27  ;;  %v1043_v37 = vrot.slane %v709_v55, 3 }
  0x3a   : > { %2817 = vmatmul.mubr.msk.bf16.vlgmr.msra.gmra.mrb[0].mxu1 %vm717_vm11, %v716_v18  ;;  %v693_v20 = vrot.slane %v691_v16, 2  ;;  %v696_v21 = vrot.slane %v694_v17, 3  ;;  %v3370_v33 = vsel %vm1027_vm14, %v1030_v19, %v3362_v23  ;;  %v3376_v35 = vor.u32 %v1040_v29, %v1039_v28  ;;  %v1413_v18 = vld [vmem:[%s3845_s6] sm:$0xf] }
  0x3b   : > { %2825 = vmatpush3.bf16.msra.mxu1 %v840_v10  ;;  %2820 = vmatprep.mubr.msk.bf16.mxu1 %vm3129_vm1, %v3128_v1  ;;  %v3379_v36 = vsel %vm733_vm0, %v1150_v27, %v1152_v30  ;;  %v1044_v38 = vrot.slane %v712_v56, 4  ;;  %v1154_v39 = vrot.slane %v3323_v47, 4  ;;  %v1156_v40 = vrot.slane %v3325_v48, 4  ;;  %v2640_v56 = vld [vmem:[%s3843_s4 + $0x10] sm:$0xf] }
  0x3c   : > { %v697_v22 = vor.u32 %v696_v21, %v693_v20  ;;  %2868 = vmatprep.subr.bf16.mxu1 %v3128_v1  ;;  %v815_v44 = vrot.slane %v3298_v25, 2  ;;  %v816_v45 = vrot.slane %v3300_v26, 2  ;;  %v1063_v53 = vsel %vm733_vm0, %v2634_v51, 0 }
  0x3d   : > { %v3386_v41 = vor.u32 %v1044_v38, %v1043_v37  ;;  %v3389_v42 = vsel %vm733_vm0, %v1152_v30, %v1154_v39  ;;  %v3394_v43 = vsel %vm733_vm0, %v1154_v39, %v1156_v40  ;;  %v917_v54 = vrot.slane %v3298_v25, 3 }
  0x3e   : > { %v698_v32 = vsel %vm672_vm10, %v688_v46, %v697_v22  ;;  %v707_v46 = vsel %vm672_vm10, %v697_v22, %v706_v4  ;;  %v817_v52 = vsel %vm814_vm15, %v815_v44, %v816_v45  ;;  %v918_v55 = vrot.slane %v3300_v26, 3 }
  0x3f   : > { %2809 = vmatmul.mubr.msk.bf16.gmra.mrb[4].mxu0 %vm717_vm11, %v698_v32  ;;  %v3404_v49 = vsel %vm1027_vm14, %v3376_v35, %v3386_v41  ;;  %vm916_vm2 = vcmask 1044480   ;;  %v818_v57 = vrot.slane %v3348_v5, 2  ;;  %v1174_v25 = vsel %vm733_vm0, %v2640_v56, 0 }
  0x40   : > { %2812 = vmatprep.mubr.msk.bf16.mxu0 %vm3129_vm1, %v3128_v1  ;;  %v919_v58 = vsel %vm916_vm2, %v917_v54, %v918_v55  ;;  %v920_v59 = vrot.slane %v3348_v5, 3  ;;  %v820_v60 = vrot.slane %v3323_v47, 2  ;;  %v922_v63 = vrot.slane %v3323_v47, 3 }
  0x41   : > { %v819_v26 = vsel %vm814_vm15, %v816_v45, %v818_v57  ;;  %v822_v0 = vrot.slane %v3325_v48, 2  ;;  %v924_v4 = vrot.slane %v3325_v48, 3  ;;  %v1036_v10 = vrot.slane %v694_v17, 4 }
  0x42   : > { %2821 = vmatmul.mubr.msk.bf16.gmra.mrb[4].mxu1 %vm717_vm11, %v715_v9  ;;  %v921_v61 = vsel %vm916_vm2, %v918_v55, %v920_v59  ;;  %v821_v62 = vsel %vm814_vm15, %v818_v57, %v820_v60  ;;  %v923_v2 = vsel %vm916_vm2, %v920_v59, %v922_v63  ;;  %v1035_v9 = vrot.slane %v691_v16, 3  ;;  %v2649_v16 = vld [vmem:[%s3845_s6 + $0x4] sm:$0xf] }
  0x43   : > { %2826 = vmatprep.mubr.msk.bf16.mxu1 %vm3129_vm1, %v3128_v1  ;;  %v823_v3 = vsel %vm814_vm15, %v820_v60, %v822_v0  ;;  %v925_v47 = vsel %vm916_vm2, %v922_v63, %v924_v4  ;;  %v1472_v17 = vsel %vm733_vm0, %v2649_v16, 0  ;;  %v1557_v48 = vsel %vm733_vm0, %v1413_v18, 0 }
  0x44   : > { %v1037_v11 = vor.u32 %v1036_v10, %v1035_v9  ;;  %vm1416_vm8 = vsmask.f32 7424  ;;  %vm1638_vm9 = vcmask 1046528  }
  0x46   : > { %v1038_v12 = vsel %vm1027_vm14, %v3362_v23, %v1037_v11  ;;  %v1042_v5 = vsel %vm1027_vm14, %v1037_v11, %v3376_v35 }
  0x47   : > { %2813 = vmatmul.mubr.msk.bf16.gmra.mrb[8].mxu0 %vm717_vm11, %v707_v46 }
  0x48   : > { %2848 = vmatprep.mubr.msk.bf16.mxu0 %vm3129_vm1, %v3128_v1 }
  0x4a   : > { %2827 = vmatmul.mubr.msk.bf16.vlgmr.msra.gmra.mrb[8].mxu1 %vm717_vm11, %v817_v52 }
  0x4b   : > { %2869 = vmatpush3.bf16.msra.mxu1 %v1063_v53  ;;  %2830 = vmatprep.mubr.msk.bf16.mxu1 %vm3129_vm1, %v3128_v1 }
  0x4c   : > { %2912 = vmatprep.subr.bf16.mxu1 %v3128_v1 }
  0x4f   : > { %2849 = vmatmul.mubr.msk.bf16.vlgmr.msra.gmra.mrb[12].mxu0 %vm717_vm11, %v919_v58 }
  0x50   : > { %2891 = vmatpush3.bf16.msra.mxu0 %v1174_v25  ;;  %2852 = vmatprep.mubr.msk.bf16.mxu0 %vm3129_vm1, %v3128_v1 }
  0x51   : > { %2934 = vmatprep.subr.bf16.mxu0 %v3128_v1 }
  0x52   : > { %2831 = vmatmul.mubr.msk.bf16.gmra.mrb[12].mxu1 %vm717_vm11, %v819_v26 }
  0x53   : > { %2834 = vmatprep.mubr.msk.bf16.mxu1 %vm3129_vm1, %v3128_v1 }
  0x57   : > { %2853 = vmatmul.mubr.msk.bf16.gmra.mrb[16].mxu0 %vm717_vm11, %v921_v61 }
  0x58   : > { %2856 = vmatprep.mubr.msk.bf16.mxu0 %vm3129_vm1, %v3128_v1 }
  0x5a   : > { %2835 = vmatmul.mubr.msk.bf16.gmra.mrb[16].mxu1 %vm717_vm11, %v821_v62 }
  0x5b   : > { %2838 = vmatprep.mubr.msk.bf16.mxu1 %vm3129_vm1, %v3128_v1 }
  0x5f   : > { %2857 = vmatmul.mubr.msk.bf16.gmra.mrb[20].mxu0 %vm717_vm11, %v923_v2 }
  0x60   : > { %2860 = vmatprep.mubr.msk.bf16.mxu0 %vm3129_vm1, %v3128_v1 }
  0x62   : > { %2839 = vmatmul.mubr.msk.bf16.gmra.mrb[20].mxu1 %vm717_vm11, %v823_v3 }
  0x63   : > { %2842 = vmatprep.mubr.msk.bf16.mxu1 %vm3129_vm1, %v3128_v1 }
  0x67   : > { %2861 = vmatmul.mubr.msk.bf16.gmra.mrb[24].mxu0 %vm717_vm11, %v925_v47 }
  0x68   : > { %2864 = vmatprep.mubr.msk.bf16.mxu0 %vm3129_vm1, %v3128_v1 }
  0x6a   : > { %2843 = vmatmul.mubr.msk.bf16.gmra.mrb[24].mxu1 %vm717_vm11, %v822_v0 }
  0x6b   : > { %2870 = vmatprep.mubr.msk.bf16.mxu1 %vm3129_vm1, %v3128_v1 }
  0x6f   : > { %2865 = vmatmul.mubr.msk.bf16.gmra.mrb[28].mxu0 %vm717_vm11, %v924_v4 }
  0x70   : > { %2892 = vmatprep.mubr.msk.bf16.mxu0 %vm3129_vm1, %v3128_v1 }
  0x72   : > { %2871 = vmatmul.mubr.msk.bf16.vlgmr.msra.gmra.mrb[28].mxu1 %vm717_vm11, %v3370_v33 }
  0x73   : > { %2874 = vmatprep.mubr.msk.bf16.mxu1 %vm3129_vm1, %v3128_v1  ;;  %2913 = vmatpush3.bf16.msra.mxu1 %v1472_v17 }
  0x74   : > { %2956 = vmatprep.subr.bf16.mxu1 %v3128_v1 }
  0x77   : > { %2893 = vmatmul.mubr.msk.bf16.vlgmr.msra.gmra.mrb[32].mxu0 %vm717_vm11, %v3374_v34 }
  0x78   : > { %2896 = vmatprep.mubr.msk.bf16.mxu0 %vm3129_vm1, %v3128_v1  ;;  %2935 = vmatpush3.bf16.msra.mxu0 %v1557_v48 }
  0x7a   : > { %2875 = vmatmul.mubr.msk.bf16.gmra.mrb[32].mxu1 %vm717_vm11, %v1038_v12 }
  0x7b   : > { %2878 = vmatprep.mubr.msk.bf16.mxu1 %vm3129_vm1, %v3128_v1 }
  0x7f   : > { %2897 = vmatmul.mubr.msk.bf16.gmra.mrb[36].mxu0 %vm717_vm11, %v3379_v36 }
  0x80   : > { %2900 = vmatprep.mubr.msk.bf16.mxu0 %vm3129_vm1, %v3128_v1 }
  0x82   : > { %2879 = vmatmul.mubr.msk.bf16.gmra.mrb[36].mxu1 %vm717_vm11, %v1042_v5 }
  0x83   : > { %2882 = vmatprep.mubr.msk.bf16.mxu1 %vm3129_vm1, %v3128_v1 }
  0x87   : > { %2901 = vmatmul.mubr.msk.bf16.gmra.mrb[40].mxu0 %vm717_vm11, %v3389_v42 }
  0x88   : > { %2904 = vmatprep.mubr.msk.bf16.mxu0 %vm3129_vm1, %v3128_v1 }
  0x8a   : > { %2883 = vmatmul.mubr.msk.bf16.gmra.mrb[40].mxu1 %vm717_vm11, %v3404_v49 }
  0x8b   : > { %2886 = vmatprep.mubr.msk.bf16.mxu1 %vm3129_vm1, %v3128_v1 }
  0x8f   : > { %2905 = vmatmul.mubr.msk.bf16.gmra.mrb[44].mxu0 %vm717_vm11, %v3394_v43 }
  0x90   : > { %2908 = vmatprep.mubr.msk.bf16.mxu0 %vm3129_vm1, %v3128_v1 }
  0x92   : > { %2887 = vmatmul.mubr.msk.bf16.gmra.mrb[44].mxu1 %vm717_vm11, %v3386_v41 }
  0x93   : > { %2914 = vmatprep.mubr.msk.bf16.mxu1 %vm3129_vm1, %v3128_v1 }
  0x97   : > { %2909 = vmatmul.mubr.msk.bf16.gmra.mrb[48].mxu0 %vm717_vm11, %v1156_v40 }
  0x98   : > { %2936 = vmatprep.mubr.msk.bf16.mxu0 %vm3129_vm1, %v3128_v1 }
 0x107   : > { %v771_v19 = vpop.f32.mrb[0].mxu0 }
 0x108   : > { %v2806_v20 = vpop.f32.mrb[1].mxu0 }
 0x109   : > { %v774_v21 = vpop.f32.mrb[2].mxu0 }
 0x10a   : > { %v2807_v22 = vpop.f32.mrb[3].mxu0 }
 0x10d   : > { %v795_v23 = vpop.f32.mrb[0].mxu1 }
 0x10e   : > { %v2818_v24 = vpop.f32.mrb[1].mxu1 }
 0x10f   : > { %v798_v27 = vpop.f32.mrb[2].mxu1 }
 0x110   : > { %v2819_v28 = vpop.f32.mrb[3].mxu1 }
 0x112   : > { %v779_v29 = vpop.f32.mrb[4].mxu0 }
 0x113   : > { %v2810_v30 = vpop.f32.mrb[5].mxu0 }
 0x114   : > { %v782_v32 = vpop.f32.mrb[6].mxu0 }
 0x115   : > { %v2811_v33 = vpop.f32.mrb[7].mxu0  ;;  %v803_v34 = vpop.f32.mrb[4].mxu1 }
 0x116   : > { %v2822_v35 = vpop.f32.mrb[5].mxu1 }
 0x117   : > { %v806_v36 = vpop.f32.mrb[6].mxu1 }
 0x118   : > { %v2823_v37 = vpop.f32.mrb[7].mxu1 }
 0x11a   : > { %v787_v38 = vpop.f32.mrb[8].mxu0 }
 0x11b   : > { %v2814_v39 = vpop.f32.mrb[9].mxu0 }
 0x11c   : > { %v790_v40 = vpop.f32.mrb[10].mxu0 }
 0x11d   : > { %v876_v41 = vpop.f32.mrb[8].mxu1  ;;  %v2815_v42 = vpop.f32.mrb[11].mxu0 }
 0x11e   : > { %v877_v43 = vadd.f32 %v876_v41, %v771_v19  ;;  %v2828_v44 = vpop.f32.mrb[9].mxu1 }
 0x11f   : > { %v879_v45 = vpop.f32.mrb[10].mxu1 }
 0x120   : > { %v880_v46 = vadd.f32 %v879_v45, %v774_v21  ;;  %v2829_v49 = vpop.f32.mrb[11].mxu1  ;;  %v1306_v45 = vlaneseq }
 0x122   : > { %v978_v51 = vpop.f32.mrb[12].mxu0 }
 0x123   : > { %v1016_v52 = vadd.f32 %v978_v51, %v877_v43  ;;  %v2850_v53 = vpop.f32.mrb[13].mxu0 }
 0x124   : > { %v981_v54 = vpop.f32.mrb[14].mxu0 }
 0x125   : > { %v884_v55 = vpop.f32.mrb[12].mxu1  ;;  %v1017_v56 = vadd.f32 %v981_v54, %v880_v46  ;;  %v2851_v57 = vpop.f32.mrb[15].mxu0 }
 0x126   : > { %v885_v58 = vadd.f32 %v884_v55, %v779_v29  ;;  %v2832_v25 = vpop.f32.mrb[13].mxu1 }
 0x127   : > { %v887_v26 = vpop.f32.mrb[14].mxu1  ;;  %v3542_v25 = vld [vmem:[%s3844_s5] ss:$0 sm:$0xff] }
 0x128   : > { %v888_v59 = vadd.f32 %v887_v26, %v782_v32  ;;  %v2833_v60 = vpop.f32.mrb[15].mxu1  ;;  %v3548_v26 = vld [vmem:[%s583_s27] ss:$0 sm:$0xff] }
 0x12a   : > { %v986_v61 = vpop.f32.mrb[16].mxu0 }
 0x12b   : > { %v1018_v62 = vadd.f32 %v986_v61, %v885_v58  ;;  %v2854_v63 = vpop.f32.mrb[17].mxu0  ;;  %v3533_v58 = vshrl.u32 %v1306_v45, 7 }
 0x12c   : > { %v989_v0 = vpop.f32.mrb[18].mxu0 }
 0x12d   : > { %v892_v2 = vpop.f32.mrb[16].mxu1  ;;  %v3521_v3 = vadd.f32 %v989_v0, %v888_v59  ;;  %v2855_v4 = vpop.f32.mrb[19].mxu0  ;;  %v1317_v59 = vadd.s32 4294967294, %v3533_v58 }
 0x12e   : > { %v893_v47 = vadd.f32 %v892_v2, %v787_v38  ;;  %v2836_v9 = vpop.f32.mrb[17].mxu1 }
 0x12f   : > { %v895_v10 = vpop.f32.mrb[18].mxu1  ;;  %vm1326_vm3 = vcmp.ge.s32.totalorder %v1317_v59, 0 }
 0x130   : > { %v896_v11 = vadd.f32 %v895_v10, %v790_v40  ;;  %v2837_v12 = vpop.f32.mrb[19].mxu1 }
 0x132   : > { %v994_v5 = vpop.f32.mrb[20].mxu0 }
 0x133   : > { %v3523_v16 = vadd.f32 %v994_v5, %v893_v47  ;;  %v2858_v17 = vpop.f32.mrb[21].mxu0  ;;  %v3552_v47 = vld [vmem:[%s586_s22] ss:$0 sm:$0xff] }
 0x134   : > { %v997_v18 = vpop.f32.mrb[22].mxu0 }
 0x135   : > { %v900_v48 = vpop.f32.mrb[20].mxu1  ;;  %v3525_v19 = vadd.f32 %v997_v18, %v896_v11  ;;  %v2859_v20 = vpop.f32.mrb[23].mxu0 }
 0x136   : > { %v901_v21 = vadd.f32 %v900_v48, %v795_v23  ;;  %v2840_v22 = vpop.f32.mrb[21].mxu1  ;;  %v3558_v48 = vstv %s2614_s16 }
 0x137   : > { %v903_v24 = vpop.f32.mrb[22].mxu1 }
 0x138   : > { %v904_v28 = vadd.f32 %v903_v24, %v798_v27  ;;  %v2841_v29 = vpop.f32.mrb[23].mxu1 }
 0x13a   : > { %v1002_v30 = vpop.f32.mrb[24].mxu0 }
 0x13b   : > { %v3527_v32 = vadd.f32 %v1002_v30, %v901_v21  ;;  %v2862_v33 = vpop.f32.mrb[25].mxu0 }
 0x13c   : > { %v1005_v35 = vpop.f32.mrb[26].mxu0 }
 0x13d   : > { %v908_v36 = vpop.f32.mrb[24].mxu1  ;;  %v3529_v37 = vadd.f32 %v1005_v35, %v904_v28  ;;  %v2863_v38 = vpop.f32.mrb[27].mxu0 }
 0x13e   : > { %v909_v39 = vadd.f32 %v908_v36, %v803_v34  ;;  %v2844_v40 = vpop.f32.mrb[25].mxu1 }
 0x13f   : > { %v911_v41 = vpop.f32.mrb[26].mxu1 }
 0x140   : > { %v2845_v42 = vpop.f32.mrb[27].mxu1 }
 0x142   : > { %v1010_v43 = vpop.f32.mrb[28].mxu0 }
 0x143   : > { %v3531_v23 = vadd.f32 %v1010_v43, %v909_v39  ;;  %v2866_v27 = vpop.f32.mrb[29].mxu0 }
 0x144   : > { %v1013_v44 = vpop.f32.mrb[30].mxu0 }
 0x145   : > { %v1099_v46 = vpop.f32.mrb[28].mxu1  ;;  %v2867_v49 = vpop.f32.mrb[31].mxu0 }
 0x146   : > { %v1137_v51 = vadd.f32 %v1099_v46, %v1016_v52  ;;  %v2872_v53 = vpop.f32.mrb[29].mxu1 }
 0x147   : > { %v1102_v54 = vpop.f32.mrb[30].mxu1 }
 0x148   : > { %v1138_v55 = vadd.f32 %v1102_v54, %v1017_v56  ;;  %v2873_v57 = vpop.f32.mrb[31].mxu1 }
 0x14a   : > { %v1210_v34 = vpop.f32.mrb[32].mxu0 }
 0x14b   : > { %v1248_v52 = vadd.f32 %v1210_v34, %v1137_v51  ;;  %v2894_v56 = vpop.f32.mrb[33].mxu0 }
 0x14c   : > { %v1213_v60 = vpop.f32.mrb[34].mxu0 }
 0x14d   : > { %v1107_v61 = vpop.f32.mrb[32].mxu1  ;;  %v1264_v63 = vadd.f32 %v3542_v25, %v1248_v52  ;;  %v1249_v0 = vadd.f32 %v1213_v60, %v1138_v55  ;;  %v2895_v2 = vpop.f32.mrb[35].mxu0 }
 0x14e   : > { %v1139_v4 = vadd.f32 %v1107_v61, %v1018_v62  ;;  %v2876_v9 = vpop.f32.mrb[33].mxu1 }
 0x14f   : > { %v1280_v10 = vmul.f32 %v3548_v26, %v1264_v63  ;;  %v1110_v11 = vpop.f32.mrb[34].mxu1  ;;  %v1265_v12 = vadd.f32 %v3542_v25, %v1249_v0 }
 0x150   : > { %v1140_v5 = vadd.f32 %v1110_v11, %v3521_v3  ;;  %v2877_v17 = vpop.f32.mrb[35].mxu1 }
 0x151   : > { %v1296_v18 = vadd.f32 %v3552_v47, %v1280_v10  ;;  %v1281_v20 = vmul.f32 %v3548_v26, %v1265_v12 }
 0x152   : > { %v1218_v21 = vpop.f32.mrb[36].mxu0 }
 0x153   : > { %v1371_v62 = vsel %vm1326_vm3, %v1296_v18, 0.0  ;;  %v1297_v22 = vadd.f32 %v3552_v47, %v1281_v20  ;;  %v1250_v24 = vadd.f32 %v1218_v21, %v1139_v4  ;;  %v2898_v28 = vpop.f32.mrb[37].mxu0  ;;  %v2660_v21 = vld [vmem:[%s3845_s6 + $0x8] sm:$0xf] }
 0x154   : > { %vm1380_vm4 = vcmp.gt.f32.partialorder %v1371_v62, 0.0  ;;  %v1390_v29 = vmul.f32 %v3558_v48, %v1371_v62  ;;  %v1221_v30 = vpop.f32.mrb[38].mxu0 }
 0x155   : > { %vm1381_vm5 = vcmp.gt.f32.partialorder %v1297_v22, 0.0  ;;  %v1391_v3 = vmul.f32 %v3558_v48, %v1297_v22  ;;  %v1115_v33 = vpop.f32.mrb[36].mxu1  ;;  %v1266_v35 = vadd.f32 %v3542_v25, %v1250_v24  ;;  %v1251_v36 = vadd.f32 %v1221_v30, %v1140_v5  ;;  %v2899_v38 = vpop.f32.mrb[39].mxu0 }
 0x156   : > { %v1399_v39 = vsel %vm1380_vm4, %v1371_v62, %v1390_v29  ;;  %v1141_v40 = vadd.f32 %v1115_v33, %v3523_v16  ;;  %v2880_v41 = vpop.f32.mrb[37].mxu1 }
 0x157   : > { %v1400_v42 = vsel %vm1381_vm5, %v1297_v22, %v1391_v3  ;;  %v1282_v43 = vmul.f32 %v3548_v26, %v1266_v35  ;;  %v1118_v27 = vpop.f32.mrb[38].mxu1  ;;  %v1267_v44 = vadd.f32 %v3542_v25, %v1251_v36  ;;  %v1664_v36 = vsel %vm733_vm0, %v2660_v21, 0 }
 0x158   : > { %v1408_v45 = vpack.c.bf16 %v1400_v42, %v1399_v39  ;;  %v1142_v46 = vadd.f32 %v1118_v27, %v3525_v19  ;;  %v2881_v49 = vpop.f32.mrb[39].mxu1 }
 0x159   : > { %v1298_v51 = vadd.f32 %v3552_v47, %v1282_v43  ;;  %v1283_v53 = vmul.f32 %v3548_v26, %v1267_v44 }
 0x15a   : > { %v1226_v54 = vpop.f32.mrb[40].mxu0  ;;  %2937 = vmatmul.mubr.msk.bf16.vlgmr.msra.gmra.mrb[52].mxu0 %vm717_vm11, %v1408_v45  ;;  %v1420_v19 = vshll.u32 %v1408_v45, 16  ;;  %v1418_v24 = vshrl.u32 %v1408_v45, 16  ;;  %v1639_v28 = vrot.slane %v1408_v45, 1 }
 0x15b   : > { %v1392_v16 = vmul.f32 %v3558_v48, %v1298_v51  ;;  %v1299_v55 = vadd.f32 %v3552_v47, %v1283_v53  ;;  %v1252_v57 = vadd.f32 %v1226_v54, %v1141_v40  ;;  %v2902_v34 = vpop.f32.mrb[41].mxu0  ;;  %2940 = vmatprep.mubr.msk.bf16.mxu0 %vm3129_vm1, %v3128_v1  ;;  %vm1382_vm6 = vcmp.gt.f32.partialorder %v1298_v51, 0.0 }
 0x15c   : > { %v1229_v52 = vpop.f32.mrb[42].mxu0  ;;  %v1422_v20 = vrot.slane %v1420_v19, 1  ;;  %v3606_v53 = vadd.s32 64, %v3533_v58 }
 0x15d   : > { %v1393_v56 = vmul.f32 %v3558_v48, %v1299_v55  ;;  %v1123_v59 = vpop.f32.mrb[40].mxu1  ;;  %v1268_v60 = vadd.f32 %v3542_v25, %v1252_v57  ;;  %v1253_v61 = vadd.f32 %v1229_v52, %v1142_v46  ;;  %v2903_v63 = vpop.f32.mrb[43].mxu0  ;;  %vm1383_vm7 = vcmp.gt.f32.partialorder %v1299_v55, 0.0 }
 0x15e   : > { %v1143_v0 = vadd.f32 %v1123_v59, %v3527_v32  ;;  %v2884_v2 = vpop.f32.mrb[41].mxu1  ;;  %v1401_v11 = vsel %vm1382_vm6, %v1298_v51, %v1392_v16  ;;  %v1423_v39 = vor.u32 %v1422_v20, %v1418_v24 }
 0x15f   : > { %v1284_v4 = vmul.f32 %v3548_v26, %v1268_v60  ;;  %v1126_v9 = vpop.f32.mrb[42].mxu1  ;;  %v1269_v10 = vadd.f32 %v3542_v25, %v1253_v61  ;;  %v1402_v12 = vsel %vm1383_vm7, %v1299_v55, %v1393_v56 }
 0x160   : > { %v1144_v5 = vadd.f32 %v1126_v9, %v3529_v37  ;;  %v2885_v17 = vpop.f32.mrb[43].mxu1  ;;  %v3582_v18 = vpack.c.bf16 %v1402_v12, %v1401_v11  ;;  %v1325_v9 = vadd.s32 4294967294, %v3606_v53 }
 0x161   : > { %v1300_v32 = vadd.f32 %v3552_v47, %v1284_v4  ;;  %v1285_v62 = vmul.f32 %v3548_v26, %v1269_v10 }
 0x162   : > { %v1234_v22 = vpop.f32.mrb[44].mxu0  ;;  %2941 = vmatmul.mubr.msk.bf16.gmra.mrb[56].mxu0 %vm717_vm11, %v3582_v18  ;;  %v1425_v37 = vshll.u32 %v3582_v18, 16  ;;  %v1640_v29 = vrot.slane %v3582_v18, 1  ;;  %v1429_v60 = vshrl.u32 %v3582_v18, 16  ;;  %vm1343_vm15 = vcmp.lt.s32.totalorder %v1325_v9, 64 }
 0x163   : > { %v1394_v30 = vmul.f32 %v3558_v48, %v1300_v32  ;;  %v1301_v3 = vadd.f32 %v3552_v47, %v1285_v62  ;;  %v1254_v33 = vadd.f32 %v1234_v22, %v1143_v0  ;;  %v2906_v35 = vpop.f32.mrb[45].mxu0  ;;  %2944 = vmatprep.mubr.msk.bf16.mxu0 %vm3129_vm1, %v3128_v1  ;;  %vm1384_vm10 = vcmp.gt.f32.partialorder %v1300_v32, 0.0 }
 0x164   : > { %v1237_v38 = vpop.f32.mrb[46].mxu0  ;;  %v1427_v40 = vrot.slane %v1425_v37, 1  ;;  %v3599_v41 = vsel %vm1638_vm9, %v1639_v28, %v1640_v29 }
 0x165   : > { %v1395_v42 = vmul.f32 %v3558_v48, %v1301_v3  ;;  %v1131_v43 = vpop.f32.mrb[44].mxu1  ;;  %v1270_v27 = vadd.f32 %v3542_v25, %v1254_v33  ;;  %v1255_v44 = vadd.f32 %v1237_v38, %v1144_v5  ;;  %v2907_v45 = vpop.f32.mrb[47].mxu0  ;;  %vm1385_vm12 = vcmp.gt.f32.partialorder %v1301_v3, 0.0 }
 0x166   : > { %v1145_v46 = vadd.f32 %v1131_v43, %v3531_v23  ;;  %v2888_v49 = vpop.f32.mrb[45].mxu1  ;;  %v1428_v51 = vsel %vm1416_vm8, %v1423_v39, %v1427_v40  ;;  %v1403_v57 = vsel %vm1384_vm10, %v1300_v32, %v1394_v30  ;;  %v1431_v12 = vor.u32 %v1429_v60, %v1427_v40 }
 0x167   : > { %v1286_v54 = vmul.f32 %v3548_v26, %v1270_v27  ;;  %v1271_v16 = vadd.f32 %v3542_v25, %v1255_v44  ;;  %2915 = vmatmul.mubr.msk.bf16.vlgmr.msra.gmra.mrb[48].mxu1 %vm717_vm11, %v1428_v51  ;;  %v1134_v55 = vpop.f32.mrb[46].mxu1  ;;  %v1404_v34 = vsel %vm1385_vm12, %v1301_v3, %v1395_v42 }
 0x168   : > { %2957 = vmatpush3.bf16.msra.mxu1 %v1664_v36  ;;  %v2889_v52 = vpop.f32.mrb[47].mxu1  ;;  %v1410_v19 = vpack.c.bf16 %v1404_v34, %v1403_v57  ;;  %2918 = vmatprep.mubr.msk.bf16.mxu1 %vm3129_vm1, %v3128_v1  ;;  %v2690_v34 = vld [vmem:[%s3849_s10 + $0x4] sm:$0xf] }
 0x169   : > { %v1302_v23 = vadd.f32 %v3552_v47, %v1286_v54  ;;  %v1287_v56 = vmul.f32 %v3548_v26, %v1271_v16  ;;  %v3672_v54 = vld [vmem:[%s3847_s8] sm:$0xf]  ;;  %3045 = vmatprep.subr.msk.bf16.mxu1 %vm733_vm0, %v2690_v34  ;;  %v2286_v52 = vsel %vm733_vm0, %v2690_v34, 0 }
 0x16a   : > { %v1242_v59 = vpop.f32.mrb[48].mxu0  ;;  %2945 = vmatmul.mubr.msk.bf16.gmra.mrb[60].mxu0 %vm717_vm11, %v1410_v19  ;;  %v1433_v61 = vshll.u32 %v1410_v19, 16  ;;  %v1642_v63 = vrot.slane %v1410_v19, 1 }
 0x16b   : > { %v1396_v0 = vmul.f32 %v3558_v48, %v1302_v23  ;;  %v1303_v2 = vadd.f32 %v3552_v47, %v1287_v56  ;;  %v1256_v4 = vadd.f32 %v1242_v59, %v1145_v46  ;;  %v2910_v10 = vpop.f32.mrb[49].mxu0  ;;  %2948 = vmatprep.mubr.msk.bf16.mxu0 %vm3129_vm1, %v3128_v1  ;;  %vm1386_vm13 = vcmp.gt.f32.partialorder %v1302_v23, 0.0 }
 0x16c   : > { %v1245_v11 = vpop.f32.mrb[50].mxu0  ;;  %v1435_v5 = vrot.slane %v1433_v61, 1  ;;  %v1643_v17 = vsel %vm1638_vm9, %v1640_v29, %v1642_v63  ;;  %v1437_v29 = vshrl.u32 %v1410_v19, 16 }
 0x16d   : > { %v1397_v18 = vmul.f32 %v3558_v48, %v1303_v2  ;;  %v1272_v20 = vadd.f32 %v3542_v25, %v1256_v4  ;;  %v2911_v21 = vpop.f32.mrb[51].mxu0  ;;  %vm1387_vm14 = vcmp.gt.f32.partialorder %v1303_v2, 0.0  ;;  %v1405_v22 = vsel %vm1386_vm13, %v1302_v23, %v1396_v0 }
 0x16e   : > { %v1436_v32 = vsel %vm1416_vm8, %v1431_v12, %v1435_v5  ;;  %v1439_v33 = vor.u32 %v1437_v29, %v1435_v5 }
 0x16f   : > { %v1288_v62 = vmul.f32 %v3548_v26, %v1272_v20  ;;  %2919 = vmatmul.mubr.msk.bf16.gmra.mrb[52].mxu1 %vm717_vm11, %v1436_v32  ;;  %v1406_v24 = vsel %vm1387_vm14, %v1303_v2, %v1397_v18 }
 0x170   : > { %v1411_v37 = vpack.c.bf16 %v1406_v24, %v1405_v22  ;;  %2922 = vmatprep.mubr.msk.bf16.mxu1 %vm3129_vm1, %v3128_v1 }
 0x171   : > { %v1304_v28 = vadd.f32 %v3552_v47, %v1288_v62 }
 0x172   : > { %2949 = vmatmul.mubr.msk.bf16.gmra.mrb[64].mxu0 %vm717_vm11, %v1411_v37  ;;  %v1441_v25 = vshll.u32 %v1411_v37, 16  ;;  %v1644_v30 = vrot.slane %v1411_v37, 1  ;;  %v1445_v40 = vshrl.u32 %v1411_v37, 16 }
 0x173   : > { %v1379_v3 = vsel %vm1343_vm15, %v1304_v28, 0.0  ;;  %2952 = vmatprep.mubr.msk.bf16.mxu0 %vm3129_vm1, %v3128_v1 }
 0x174   : > { %v1398_v26 = vmul.f32 %v3558_v48, %v1379_v3  ;;  %v1443_v35 = vrot.slane %v1441_v25, 1  ;;  %vm1388_vm2 = vcmp.gt.f32.partialorder %v1379_v3, 0.0  ;;  %v1645_v36 = vsel %vm1638_vm9, %v1642_v63, %v1644_v30 }
 0x176   : > { %v1444_v38 = vsel %vm1416_vm8, %v1439_v33, %v1443_v35  ;;  %v1407_v39 = vsel %vm1388_vm2, %v1379_v3, %v1398_v26  ;;  %v1447_v27 = vor.u32 %v1445_v40, %v1443_v35 }
 0x177   : > { %2923 = vmatmul.mubr.msk.bf16.gmra.mrb[56].mxu1 %vm717_vm11, %v1444_v38  ;;  %v1412_v47 = vpack.c.bf16 %v1407_v39, %v1407_v39 }
 0x178   : > { %2926 = vmatprep.mubr.msk.bf16.mxu1 %vm3129_vm1, %v3128_v1 }
 0x179   : > { %v1449_v42 = vshll.u32 %v1412_v47, 16  ;;  %v1646_v43 = vrot.slane %v1412_v47, 1  ;;  %v1453_v46 = vshrl.u32 %v1412_v47, 16 }
 0x17a   : > { %2953 = vmatmul.mubr.msk.bf16.gmra.mrb[68].mxu0 %vm717_vm11, %v1412_v47 }
 0x17b   : > { %v1451_v48 = vrot.slane %v1449_v42, 1  ;;  %v1647_v44 = vsel %vm1638_vm9, %v1644_v30, %v1646_v43 }
 0x17d   : > { %v1452_v45 = vsel %vm1416_vm8, %v1447_v27, %v1451_v48  ;;  %v1455_v49 = vor.u32 %v1453_v46, %v1451_v48 }
 0x17f   : > { %2927 = vmatmul.mubr.msk.bf16.gmra.mrb[60].mxu1 %vm717_vm11, %v1452_v45 }
 0x180   : > { %2930 = vmatprep.mubr.msk.bf16.mxu1 %vm3129_vm1, %v3128_v1 }
 0x187   : > { %2931 = vmatmul.mubr.msk.bf16.gmra.mrb[64].mxu1 %vm717_vm11, %v1455_v49 }
 0x188   : > { %2958 = vmatprep.mubr.msk.bf16.mxu1 %vm3129_vm1, %v3128_v1 }
 0x18f   : > { %2959 = vmatmul.mubr.msk.bf16.vlgmr.msra.gmra.mrb[68].mxu1 %vm717_vm11, %v3599_v41  ;;  %v2667_v41 = vld [vmem:[%s3847_s8 + $0x4] sm:$0xf] }
 0x190   : > { %2962 = vmatprep.mubr.msk.bf16.mxu1 %vm3129_vm1, %v3128_v1  ;;  %3042 = vmatprep.subr.msk.bf16.mxu0 %vm733_vm0, %v2667_v41  ;;  %v1913_v51 = vsel %vm733_vm0, %v2667_v41, 0  ;;  %v1765_v41 = vadd.s32 4294967295, %v3533_v58 }
 0x191   : > { %2979 = vmatpush3.bf16.msra.mxu0 %v1913_v51  ;;  %3009 = vmatpush3.bf16.msra.mxu1 %v2286_v52  ;;  %v3694_v52 = vstv %s2615_s19  ;;  %s3776_s19 = scalar_lea.vmem %s3853_s14, %s3263_s28 }
 0x192   : > { %3043 = vmatprep.subr.msk.bf16.mxu0 %vm733_vm0, %v3672_v54 }
 0x197   : > { %2963 = vmatmul.mubr.msk.bf16.gmra.mrb[72].mxu1 %vm717_vm11, %v1643_v17 }
 0x198   : > { %2966 = vmatprep.mubr.msk.bf16.mxu1 %vm3129_vm1, %v3128_v1 }
 0x19f   : > { %2967 = vmatmul.mubr.msk.bf16.gmra.mrb[76].mxu1 %vm717_vm11, %v1645_v36 }
 0x1a0   : > { %2970 = vmatprep.mubr.msk.bf16.mxu1 %vm3129_vm1, %v3128_v1 }
 0x1a7   : > { %2971 = vmatmul.mubr.msk.bf16.gmra.mrb[80].mxu1 %vm717_vm11, %v1647_v44 }
 0x1a8   : > { %2974 = vmatprep.mubr.msk.bf16.mxu1 %vm3129_vm1, %v3128_v1  ;;  %vm1774_vm1 = vcmp.ge.s32.totalorder %v1765_v41, 0 }
 0x1af   : > { %2975 = vmatmul.mubr.msk.bf16.gmra.mrb[84].mxu1 %vm717_vm11, %v1646_v43 }
 0x22d   : > { %v1593_v1 = vpop.f32.mrb[52].mxu0 }
 0x22e   : > { %v2938_v16 = vpop.f32.mrb[53].mxu0 }
 0x22f   : > { %v1596_v55 = vpop.f32.mrb[54].mxu0 }
 0x230   : > { %v2939_v57 = vpop.f32.mrb[55].mxu0 }
 0x235   : > { %v1601_v19 = vpop.f32.mrb[56].mxu0 }
 0x236   : > { %v2942_v23 = vpop.f32.mrb[57].mxu0 }
 0x237   : > { %v1604_v56 = vpop.f32.mrb[58].mxu0 }
 0x238   : > { %v2943_v59 = vpop.f32.mrb[59].mxu0 }
 0x23a   : > { %v1508_v60 = vpop.f32.mrb[48].mxu1 }
 0x23b   : > { %v1594_v61 = vadd.f32 %v1593_v1, %v1508_v60  ;;  %v2916_v63 = vpop.f32.mrb[49].mxu1  ;;  %v3691_v1 = vld [vmem:[%s3846_s7] ss:$0 sm:$0xff] }
 0x23c   : > { %v1511_v0 = vpop.f32.mrb[50].mxu1 }
 0x23d   : > { %v1597_v2 = vadd.f32 %v1596_v55, %v1511_v0  ;;  %v2917_v4 = vpop.f32.mrb[51].mxu1  ;;  %v1609_v9 = vpop.f32.mrb[60].mxu0 }
 0x23e   : > { %v2946_v10 = vpop.f32.mrb[61].mxu0 }
 0x23f   : > { %v1612_v11 = vpop.f32.mrb[62].mxu0 }
 0x240   : > { %v2947_v12 = vpop.f32.mrb[63].mxu0 }
 0x242   : > { %v1516_v5 = vpop.f32.mrb[52].mxu1 }
 0x243   : > { %v1602_v17 = vadd.f32 %v1601_v19, %v1516_v5  ;;  %v2920_v18 = vpop.f32.mrb[53].mxu1 }
 0x244   : > { %v1519_v20 = vpop.f32.mrb[54].mxu1 }
 0x245   : > { %v1605_v21 = vadd.f32 %v1604_v56, %v1519_v20  ;;  %v2921_v32 = vpop.f32.mrb[55].mxu1  ;;  %v1617_v62 = vpop.f32.mrb[64].mxu0 }
 0x246   : > { %v2950_v22 = vpop.f32.mrb[65].mxu0 }
 0x247   : > { %v1620_v24 = vpop.f32.mrb[66].mxu0 }
 0x248   : > { %v2951_v37 = vpop.f32.mrb[67].mxu0 }
 0x24a   : > { %v1524_v28 = vpop.f32.mrb[56].mxu1 }
 0x24b   : > { %v1610_v29 = vadd.f32 %v1609_v9, %v1524_v28  ;;  %v2924_v25 = vpop.f32.mrb[57].mxu1 }
 0x24c   : > { %v1527_v30 = vpop.f32.mrb[58].mxu1 }
 0x24d   : > { %v1613_v3 = vadd.f32 %v1612_v11, %v1527_v30  ;;  %v2925_v33 = vpop.f32.mrb[59].mxu1  ;;  %v1625_v26 = vpop.f32.mrb[68].mxu0 }
 0x24e   : > { %v2954_v35 = vpop.f32.mrb[69].mxu0 }
 0x24f   : > { %v1628_v36 = vpop.f32.mrb[70].mxu0 }
 0x250   : > { %v2955_v38 = vpop.f32.mrb[71].mxu0 }
 0x252   : > { %v1532_v39 = vpop.f32.mrb[60].mxu1 }
 0x253   : > { %v3681_v47 = vadd.f32 %v1617_v62, %v1532_v39  ;;  %v2928_v40 = vpop.f32.mrb[61].mxu1 }
 0x254   : > { %v1535_v42 = vpop.f32.mrb[62].mxu1 }
 0x255   : > { %v3683_v43 = vadd.f32 %v1620_v24, %v1535_v42  ;;  %v2929_v27 = vpop.f32.mrb[63].mxu1 }
 0x25a   : > { %v1540_v48 = vpop.f32.mrb[64].mxu1 }
 0x25b   : > { %v3685_v44 = vadd.f32 %v1625_v26, %v1540_v48  ;;  %v2932_v45 = vpop.f32.mrb[65].mxu1 }
 0x25c   : > { %v1543_v46 = vpop.f32.mrb[66].mxu1 }
 0x25d   : > { %v2933_v49 = vpop.f32.mrb[67].mxu1 }
 0x262   : > { %v1700_v51 = vpop.f32.mrb[68].mxu1 }
 0x263   : > { %v1738_v16 = vadd.f32 %v1700_v51, %v1594_v61  ;;  %v2960_v55 = vpop.f32.mrb[69].mxu1 }
 0x264   : > { %v1703_v57 = vpop.f32.mrb[70].mxu1 }
 0x265   : > { %v1754_v34 = vadd.f32 %v3691_v1, %v1738_v16  ;;  %v1739_v19 = vadd.f32 %v1703_v57, %v1597_v2  ;;  %v2961_v23 = vpop.f32.mrb[71].mxu1 }
 0x267   : > { %v1819_v56 = vsel %vm1774_vm1, %v1754_v34, 0.0  ;;  %v1755_v59 = vadd.f32 %v3691_v1, %v1739_v19 }
 0x268   : > { %vm1828_vm3 = vcmp.gt.f32.partialorder %v1819_v56, 0.0  ;;  %v1838_v58 = vmul.f32 %v3694_v52, %v1819_v56 }
 0x269   : > { %vm1829_vm4 = vcmp.gt.f32.partialorder %v1755_v59, 0.0  ;;  %v1839_v60 = vmul.f32 %v3694_v52, %v1755_v59 }
 0x26a   : > { %v1847_v63 = vsel %vm1828_vm3, %v1819_v56, %v1838_v58  ;;  %v1708_v61 = vpop.f32.mrb[72].mxu1 }
 0x26b   : > { %v1848_v0 = vsel %vm1829_vm4, %v1755_v59, %v1839_v60  ;;  %v1740_v4 = vadd.f32 %v1708_v61, %v1602_v17  ;;  %v2964_v9 = vpop.f32.mrb[73].mxu1 }
 0x26c   : > { %v3699_v10 = vpack.c.bf16 %v1848_v0, %v1847_v63  ;;  %v1711_v11 = vpop.f32.mrb[74].mxu1 }
 0x26d   : > { %v1756_v2 = vadd.f32 %v3691_v1, %v1740_v4  ;;  %v1741_v12 = vadd.f32 %v1711_v11, %v1605_v21  ;;  %v2965_v5 = vpop.f32.mrb[75].mxu1 }
 0x26e   : > { %v1867_v32 = vshll.u32 %v3699_v10, 16  ;;  %v1865_v36 = vshrl.u32 %v3699_v10, 16  ;;  %v2063_v39 = vrot.slane %v3699_v10, 1  ;;  %v2676_v5 = vld [vmem:[%s3847_s8 + $0x8] sm:$0xf] }
 0x26f   : > { %v1840_v18 = vmul.f32 %v3694_v52, %v1756_v2  ;;  %v1757_v20 = vadd.f32 %v3691_v1, %v1741_v12  ;;  %vm1830_vm5 = vcmp.gt.f32.partialorder %v1756_v2, 0.0 }
 0x270   : > { %v1869_v21 = vrot.slane %v1867_v32, 1 }
 0x271   : > { %vm1831_vm6 = vcmp.gt.f32.partialorder %v1757_v20, 0.0  ;;  %v1841_v62 = vmul.f32 %v3694_v52, %v1757_v20  ;;  %v1849_v17 = vsel %vm1830_vm5, %v1756_v2, %v1840_v18 }
 0x272   : > { %v1716_v22 = vpop.f32.mrb[76].mxu1  ;;  %v1870_v27 = vor.u32 %v1869_v21, %v1865_v36 }
 0x273   : > { %v1850_v24 = vsel %vm1831_vm6, %v1757_v20, %v1841_v62  ;;  %v1742_v37 = vadd.f32 %v1716_v22, %v1610_v29  ;;  %v2968_v28 = vpop.f32.mrb[77].mxu1 }
 0x274   : > { %v3706_v25 = vpack.c.bf16 %v1850_v24, %v1849_v17  ;;  %v1719_v30 = vpop.f32.mrb[78].mxu1 }
 0x275   : > { %v1758_v33 = vadd.f32 %v3691_v1, %v1742_v37  ;;  %v1743_v26 = vadd.f32 %v1719_v30, %v1613_v3  ;;  %v2969_v35 = vpop.f32.mrb[79].mxu1 }
 0x276   : > { %v1872_v38 = vshll.u32 %v3706_v25, 16  ;;  %v2064_v40 = vrot.slane %v3706_v25, 1  ;;  %v1876_v59 = vshrl.u32 %v3706_v25, 16 }
 0x277   : > { %v1842_v42 = vmul.f32 %v3694_v52, %v1758_v33  ;;  %v1759_v29 = vadd.f32 %v3691_v1, %v1743_v26  ;;  %vm1832_vm7 = vcmp.gt.f32.partialorder %v1758_v33, 0.0 }
 0x278   : > { %v1874_v48 = vrot.slane %v1872_v38, 1  ;;  %v3716_v45 = vsel %vm1638_vm9, %v2063_v39, %v2064_v40 }
 0x279   : > { %vm1833_vm10 = vcmp.gt.f32.partialorder %v1759_v29, 0.0  ;;  %v1843_v3 = vmul.f32 %v3694_v52, %v1759_v29  ;;  %v1851_v41 = vsel %vm1832_vm7, %v1758_v33, %v1842_v42 }
 0x27a   : > { %v1724_v46 = vpop.f32.mrb[80].mxu1  ;;  %v1875_v49 = vsel %vm1416_vm8, %v1870_v27, %v1874_v48  ;;  %v1878_v0 = vor.u32 %v1876_v59, %v1874_v48 }
 0x27b   : > { %v1852_v51 = vsel %vm1833_vm10, %v1759_v29, %v1843_v3  ;;  %v1744_v16 = vadd.f32 %v1724_v46, %v3681_v47  ;;  %v2972_v55 = vpop.f32.mrb[81].mxu1  ;;  %2980 = vmatprep.mubr.msk.bf16.mxu0 %vm717_vm11, %v1875_v49  ;;  %v1773_v47 = vadd.s32 4294967295, %v3606_v53  ;;  %v3769_v49 = vstv %s2616_s25 }
 0x27c   : > { %v1858_v57 = vpack.c.bf16 %v1852_v51, %v1851_v41  ;;  %v1727_v34 = vpop.f32.mrb[82].mxu1 }
 0x27d   : > { %v1760_v19 = vadd.f32 %v3691_v1, %v1744_v16  ;;  %v1745_v23 = vadd.f32 %v1727_v34, %v3683_v43  ;;  %v2973_v56 = vpop.f32.mrb[83].mxu1  ;;  %v1989_v43 = vsel %vm733_vm0, %v3672_v54, 0  ;;  %vm1791_vm14 = vcmp.lt.s32.totalorder %v1773_v47, 64 }
 0x27e   : > { %v1880_v58 = vshll.u32 %v1858_v57, 16  ;;  %v2066_v60 = vrot.slane %v1858_v57, 1  ;;  %v1884_v24 = vshrl.u32 %v1858_v57, 16 }
 0x27f   : > { %v1844_v63 = vmul.f32 %v3694_v52, %v1760_v19  ;;  %v1761_v61 = vadd.f32 %v3691_v1, %v1745_v23  ;;  %vm1834_vm12 = vcmp.gt.f32.partialorder %v1760_v19, 0.0 }
 0x280   : > { %v1882_v4 = vrot.slane %v1880_v58, 1  ;;  %v2067_v9 = vsel %vm1638_vm9, %v2064_v40, %v2066_v60 }
 0x281   : > { %vm1835_vm13 = vcmp.gt.f32.partialorder %v1761_v61, 0.0  ;;  %v1845_v11 = vmul.f32 %v3694_v52, %v1761_v61  ;;  %v1853_v18 = vsel %vm1834_vm12, %v1760_v19, %v1844_v63 }
 0x282   : > { %v1732_v2 = vpop.f32.mrb[84].mxu1  ;;  %v1883_v12 = vsel %vm1416_vm8, %v1878_v0, %v1882_v4  ;;  %v1886_v21 = vor.u32 %v1884_v24, %v1882_v4 }
 0x283   : > { %v1854_v53 = vsel %vm1835_vm13, %v1761_v61, %v1845_v11  ;;  %v1746_v20 = vadd.f32 %v1732_v2, %v3685_v44  ;;  %v2976_v32 = vpop.f32.mrb[85].mxu1  ;;  %2981 = vmatmul.mubr.msk.bf16.vlgmr.msra.gmra.mrb[72].mxu0 %vm717_vm11, %v1883_v12 }
 0x284   : > { %v1859_v62 = vpack.c.bf16 %v1854_v53, %v1853_v18  ;;  %v1735_v22 = vpop.f32.mrb[86].mxu1  ;;  %2989 = vmatpush3.bf16.msra.mxu0 %v1989_v43 }
 0x285   : > { %v1762_v54 = vadd.f32 %v3691_v1, %v1746_v20  ;;  %v2977_v17 = vpop.f32.mrb[87].mxu1  ;;  %3044 = vmatprep.subr.msk.bf16.mxu0 %vm733_vm0, %v2676_v5 }
 0x286   : > { %v1888_v37 = vshll.u32 %v1859_v62, 16  ;;  %v2068_v28 = vrot.slane %v1859_v62, 1  ;;  %v1892_v1 = vshrl.u32 %v1859_v62, 16 }
 0x287   : > { %v1827_v30 = vsel %vm1791_vm14, %v1762_v54, 0.0 }
 0x288   : > { %vm1836_vm15 = vcmp.gt.f32.partialorder %v1827_v30, 0.0  ;;  %v1846_v44 = vmul.f32 %v3694_v52, %v1827_v30  ;;  %v1890_v33 = vrot.slane %v1888_v37, 1  ;;  %v2069_v26 = vsel %vm1638_vm9, %v2066_v60, %v2068_v28 }
 0x289   : > { %v2085_v52 = vsel %vm733_vm0, %v2676_v5, 0 }
 0x28a   : > { %v1855_v35 = vsel %vm1836_vm15, %v1827_v30, %v1846_v44  ;;  %v1891_v36 = vsel %vm1416_vm8, %v1886_v21, %v1890_v33  ;;  %v1894_v42 = vor.u32 %v1892_v1, %v1890_v33 }
 0x28b   : > { %v1860_v38 = vpack.c.bf16 %v1855_v35, %v1855_v35  ;;  %2984 = vmatprep.mubr.msk.bf16.mxu0 %vm717_vm11, %v1891_v36 }
 0x28d   : > { %v1896_v39 = vshll.u32 %v1860_v38, 16  ;;  %v2070_v40 = vrot.slane %v1860_v38, 1 }
 0x28f   : > { %v1898_v29 = vrot.slane %v1896_v39, 1  ;;  %v2071_v27 = vsel %vm1638_vm9, %v2068_v28, %v2070_v40 }
 0x291   : > { %v1899_v48 = vsel %vm1416_vm8, %v1894_v42, %v1898_v29  ;;  %vm2215_vm8 = vcmask 60416  }
 0x292   : > { %2985 = vmatmul.mubr.msk.bf16.gmra.mrb[76].mxu0 %vm717_vm11, %v1899_v48 }
 0x293   : > { %2990 = vmatprep.mubr.msk.bf16.mxu0 %vm717_vm11, %v3699_v10  ;;  %v3762_v10 = vld [vmem:[%s3849_s10] sm:$0xf] }
 0x294   : > { %3046 = vmatprep.subr.msk.bf16.mxu1 %vm733_vm0, %v3762_v10  ;;  %v2344_v42 = vsel %vm733_vm0, %v3762_v10, 0  ;;  %vm2406_vm0 = vcmask 130048  }
 0x29a   : > { %2991 = vmatmul.mubr.msk.bf16.vlgmr.msra.gmra.mrb[72].mxu0 %vm717_vm11, %v3706_v25  ;;  %v2681_v25 = vld [vmem:[%s3848_s9] ss:$0 sm:$0xff] }
 0x29b   : > { %2999 = vmatpush3.bf16.msra.mxu0 %v2085_v52  ;;  %2994 = vmatprep.mubr.msk.bf16.mxu0 %vm717_vm11, %v1858_v57 }
 0x2a2   : > { %2995 = vmatmul.mubr.msk.bf16.gmra.mrb[76].mxu0 %vm717_vm11, %v1859_v62 }
 0x2a3   : > { %3000 = vmatprep.mubr.msk.bf16.mxu0 %vm717_vm11, %v3716_v45 }
 0x2aa   : > { %3001 = vmatmul.mubr.msk.bf16.vlgmr.msra.gmra.mrb[72].mxu0 %vm717_vm11, %v2067_v9 }
 0x2ab   : > { %3004 = vmatprep.mubr.msk.bf16.mxu0 %vm717_vm11, %v2069_v26 }
 0x2b2   : > { %3005 = vmatmul.mubr.msk.bf16.gmra.mrb[76].mxu0 %vm717_vm11, %v2071_v27 }
 0x37d   : > { %v3002_v45 = vpop.f32.mrb[72].mxu0 }
 0x37e   : > { %v2169_v3 = vadd.f32 %v3002_v45, %v2681_v25  ;;  %v2121_v46 = vpop.f32.mrb[73].mxu0 }
 0x37f   : > { %v2167_v41 = vadd.f32 %v2681_v25, %v2121_v46  ;;  %v3003_v51 = vpop.f32.mrb[74].mxu0 }
 0x380   : > { %v2177_v16 = vadd.f32 %v3278_v8, %v2169_v3  ;;  %v2170_v55 = vadd.f32 %v3003_v51, %v2681_v25  ;;  %v2124_v57 = vpop.f32.mrb[75].mxu0 }
 0x381   : > { %v2175_v34 = vadd.f32 %v3274_v6, %v2167_v41  ;;  %v2168_v19 = vadd.f32 %v2681_v25, %v2124_v57 }
 0x382   : > { %v2704_v23 = vpack.c.bf16 %v2177_v16, %v2177_v16  ;;  %vm2226_vm9 = vcmp.gt.f32.partialorder %v2177_v16, 0.0  ;;  %v2235_v56 = vmul.f32 %v3769_v49, %v2177_v16  ;;  %v2178_v59 = vadd.f32 %v3305_v31, %v2170_v55 }
 0x383   : > { %v2702_v8 = vpack.c.bf16 %v2175_v34, %v2175_v34  ;;  %vm2224_vm2 = vcmp.gt.f32.partialorder %v2175_v34, 0.0  ;;  %v2233_v58 = vmul.f32 %v3769_v49, %v2175_v34  ;;  %v2176_v60 = vadd.f32 %v3276_v7, %v2168_v19 }
 0x384   : > { %2218 = vst.msk [vmem:[%s3776_s19 + $0x8] sm:$0xf] %vm2215_vm8, %v2704_v23  ;;  %v2243_v63 = vsel %vm2226_vm9, %v2177_v16, %v2235_v56  ;;  %v2705_v61 = vpack.c.bf16 %v2178_v59, %v2178_v59  ;;  %vm2227_vm1 = vcmp.gt.f32.partialorder %v2178_v59, 0.0  ;;  %v2236_v6 = vmul.f32 %v3769_v49, %v2178_v59 }
 0x385   : > { %2251 = vst.msk [vmem:[#allocation2 + $0x10] sm:$0xff] %vm717_vm11, %v2243_v63  ;;  %v2241_v31 = vsel %vm2224_vm2, %v2175_v34, %v2233_v58  ;;  %v2703_v47 = vpack.c.bf16 %v2176_v60, %v2176_v60  ;;  %vm2225_vm3 = vcmp.gt.f32.partialorder %v2176_v60, 0.0  ;;  %v2234_v0 = vmul.f32 %v3769_v49, %v2176_v60  ;;  %v3006_v4 = vpop.f32.mrb[76].mxu0 }
 0x386   : > { %2216 = vst.msk [vmem:[%s3776_s19] sm:$0xf] %vm2215_vm8, %v2702_v8  ;;  %2219 = vst.msk [vmem:[%s3776_s19 + $0xc] sm:$0xf] %vm2215_vm8, %v2705_v61  ;;  %v2244_v7 = vsel %vm2227_vm1, %v2178_v59, %v2236_v6  ;;  %v2173_v9 = vadd.f32 %v3006_v4, %v2681_v25  ;;  %v2137_v11 = vpop.f32.mrb[77].mxu0 }
 0x387   : > { %2249 = vst.msk [vmem:[#allocation2] sm:$0xff] %vm717_vm11, %v2241_v31  ;;  %2252 = vst.msk [vmem:[#allocation2 + $0x18] sm:$0xff] %vm717_vm11, %v2244_v7  ;;  %v2242_v43 = vsel %vm2225_vm3, %v2176_v60, %v2234_v0  ;;  %v2171_v2 = vadd.f32 %v2681_v25, %v2137_v11  ;;  %v3007_v12 = vpop.f32.mrb[78].mxu0 }
 0x388   : > { %2217 = vst.msk [vmem:[%s3776_s19 + $0x4] sm:$0xf] %vm2215_vm8, %v2703_v47  ;;  %v2181_v5 = vadd.f32 %v3282_v14, %v2173_v9  ;;  %v2174_v18 = vadd.f32 %v3007_v12, %v2681_v25  ;;  %v2140_v53 = vpop.f32.mrb[79].mxu0 }
 0x389   : > { %2250 = vst.msk [vmem:[#allocation2 + $0x8] sm:$0xff] %vm717_vm11, %v2242_v43  ;;  %v2179_v20 = vadd.f32 %v3328_v50, %v2171_v2  ;;  %v2172_v32 = vadd.f32 %v2681_v25, %v2140_v53  ;;  %v2695_v25 = vld [vmem:[%s3850_s11] ss:$0 sm:$0xff] }
 0x38a   : > { %v2708_v62 = vpack.c.bf16 %v2181_v5, %v2181_v5  ;;  %vm2230_vm4 = vcmp.gt.f32.partialorder %v2181_v5, 0.0  ;;  %v2239_v22 = vmul.f32 %v3769_v49, %v2181_v5  ;;  %v2182_v54 = vadd.f32 %v3284_v15, %v2174_v18 }
 0x38b   : > { %v2706_v17 = vpack.c.bf16 %v2179_v20, %v2179_v20  ;;  %vm2228_vm5 = vcmp.gt.f32.partialorder %v2179_v20, 0.0  ;;  %v2237_v24 = vmul.f32 %v3769_v49, %v2179_v20  ;;  %v2180_v37 = vadd.f32 %v3280_v13, %v2172_v32 }
 0x38c   : > { %2222 = vst.msk [vmem:[%s3776_s19 + $0x18] sm:$0xf] %vm2215_vm8, %v2708_v62  ;;  %v2247_v14 = vsel %vm2230_vm4, %v2181_v5, %v2239_v22  ;;  %v2709_v50 = vpack.c.bf16 %v2182_v54, %v2182_v54  ;;  %vm2231_vm6 = vcmp.gt.f32.partialorder %v2182_v54, 0.0  ;;  %v2240_v28 = vmul.f32 %v3769_v49, %v2182_v54 }
 0x38d   : > { %2255 = vst.msk [vmem:[#allocation2 + $0x30] sm:$0xff] %vm717_vm11, %v2247_v14  ;;  %v2245_v15 = vsel %vm2228_vm5, %v2179_v20, %v2237_v24  ;;  %v2707_v30 = vpack.c.bf16 %v2180_v37, %v2180_v37  ;;  %vm2229_vm7 = vcmp.gt.f32.partialorder %v2180_v37, 0.0  ;;  %v2238_v21 = vmul.f32 %v3769_v49, %v2180_v37 }
 0x38e   : > { %2220 = vst.msk [vmem:[%s3776_s19 + $0x10] sm:$0xf] %vm2215_vm8, %v2706_v17  ;;  %2223 = vst.msk [vmem:[%s3776_s19 + $0x1c] sm:$0xf] %vm2215_vm8, %v2709_v50  ;;  %v2248_v13 = vsel %vm2231_vm6, %v2182_v54, %v2240_v28  ;;  %v2270_v44 = vld [vmem:[#allocation2 + $0x11] ss:$2 sm:$0xff] }
 0x38f   : > { %2253 = vst.msk [vmem:[#allocation2 + $0x20] sm:$0xff] %vm717_vm11, %v2245_v15  ;;  %2256 = vst.msk [vmem:[#allocation2 + $0x38] sm:$0xff] %vm717_vm11, %v2248_v13  ;;  %v2246_v33 = vsel %vm2229_vm7, %v2180_v37, %v2238_v21  ;;  %v2259_v1 = vld [vmem:[#allocation2 + $0x10] ss:$2 sm:$0xff] }
 0x390   : > { %2221 = vst.msk [vmem:[%s3776_s19 + $0x14] sm:$0xf] %vm2215_vm8, %v2707_v30  ;;  %v2268_v26 = vld [vmem:[#allocation2 + $0x1] ss:$2 sm:$0xff]  ;;  %v2257_v38 = vld [vmem:[#allocation2] ss:$2 sm:$0xff] }
 0x391   : > { %2254 = vst.msk [vmem:[#allocation2 + $0x28] sm:$0xff] %vm717_vm11, %v2246_v33  ;;  %v2275_v35 = vpack.c.bf16 %v2270_v44, %v2268_v26  ;;  %v2264_v29 = vpack.c.bf16 %v2259_v1, %v2257_v38 }
 0x393   : > { %3010 = vmatprep.mubr.msk.bf16.mxu1 %vm717_vm11, %v2275_v35 }
 0x396   : > { %v2274_v36 = vld [vmem:[#allocation2 + $0x31] ss:$2 sm:$0xff]  ;;  %v2263_v48 = vld [vmem:[#allocation2 + $0x30] ss:$2 sm:$0xff] }
 0x398   : > { %v2272_v39 = vld [vmem:[#allocation2 + $0x21] ss:$2 sm:$0xff]  ;;  %v2261_v27 = vld [vmem:[#allocation2 + $0x20] ss:$2 sm:$0xff] }
 0x399   : > { %v2276_v40 = vpack.c.bf16 %v2274_v36, %v2272_v39  ;;  %v2265_v52 = vpack.c.bf16 %v2263_v48, %v2261_v27 }
 0x39b   : > { %3011 = vmatmul.mubr.msk.bf16.vlgmr.msra.gmra.mrb[88].mxu1 %vm717_vm11, %v2276_v40 }
 0x39c   : > { %3015 = vmatpush3.bf16.msra.mxu1 %v2344_v42  ;;  %3016 = vmatprep.mubr.msk.bf16.mxu1 %vm717_vm11, %v2264_v29 }
 0x3a7   : > { %3017 = vmatmul.mubr.msk.bf16.vlgmr.msra.gmra.mrb[88].mxu1 %vm717_vm11, %v2265_v52 }
 0x47a   : > { %v3018_v10 = vpop.f32.mrb[88].mxu1 }
 0x47b   : > { %v2404_v45 = vadd.f32 %v3018_v10, %v2695_v25  ;;  %v2380_v3 = vpop.f32.mrb[89].mxu1 }
 0x47c   : > { %v2402_v46 = vadd.f32 %v2695_v25, %v2380_v3  ;;  %v3019_v49 = vpop.f32.mrb[90].mxu1 }
 0x47d   : > { %2409 = vst.msk [vmem:[%s595_s23 + $0x10] sm:$0xff] %vm2406_vm0, %v2404_v45  ;;  %v2405_v41 = vadd.f32 %v3019_v49, %v2695_v25  ;;  %v2383_v51 = vpop.f32.mrb[91].mxu1 }
 0x47e   : > { %2407 = vst.msk [vmem:[%s595_s23] sm:$0xff] %vm2406_vm0, %v2402_v46  ;;  %v2403_v16 = vadd.f32 %v2695_v25, %v2383_v51 }
 0x47f   : > { %2410 = vst.msk [vmem:[%s595_s23 + $0x18] sm:$0xff] %vm2406_vm0, %v2405_v41 }
 0x480   : > { %2408 = vst.msk [vmem:[%s595_s23 + $0x8] sm:$0xff] %vm2406_vm0, %v2403_v16 }
 0x481 PF: > { %s26_s15 = sadd.s32 1, %s3125_s15   ;;  %s3856_s29 = smov %s3121_s30 }
 0x482   : > { %p23_p2 = scmp.ge.s32.totalorder %s26_s15, 4   ;;  %s3857_s30 = smov %s3859_s17 }
 0x484   :  { %25 = sbr.rel (!%p23_p2) target bundleno = 2 (0x2), region = 144 }
 0x48b   :  { %2466 = vsyncpa [#allocation4], 1 }
 0x48c   :  { %2468 = vsyncpa [#allocation4 + $0x1], 1 }

</bundles_post_ra>
